<compile_context>
chip_gen: v7x
topology: tpu7x:2x2x1
jax: 0.10.0
libtpu: 0.0.40
codegen_flags: <defaults>
</compile_context>

<pallas_src>
import numpy as np
import jax
import jax.numpy as jnp
from jax import lax
from jax.experimental import pallas as pl
from jax.experimental.pallas import tpu as pltpu

VOCAB = 20      # vocab_size
TAGSET = 5      # tagset_size
EMBED = 8       # embedding_dim
HIDDEN = 32     # hidden_dim (per-direction H = 16)
T = 8           # sequence length

H = HIDDEN // 2          # 16
H2 = HIDDEN              # 32  (concatenated [h_f|h_b] width)
G = 4 * HIDDEN           # 128 (8H: both directions, gate-interleaved)
K = TAGSET               # 5

# --- packed parameter slab layout (rows, all 8-aligned; 128 lanes, f32) -------------
ROW_EMW = 0      # (VOCAB, 128)  embed @ w_ih (both dirs, gate-interleaved)
ROW_WHH = 24     # (H2, 128)     block-diagonal recurrent weights
ROW_B   = 56     # (1, 128)      b_ih + b_hh (both dirs)
ROW_S0  = 64     # (2, 128)      [h0_f|h0_b] ; [c0_f|c0_b]   (lanes 0..2H-1)
ROW_WHT = 72     # (H2, 128)     hidden2tag weight (lanes 0..K-1, rest zero)
ROW_BHT = 104    # (1, 128)      hidden2tag bias   (lanes 0..K-1)
ROW_TR  = 112    # (K, 128)      CRF transitions   (lanes 0..K-1)
ROW_TRT = 120    # (K, 128)      CRF transitions^T (lanes 0..K-1)
SLAB_ROWS = 128

PATH_LANE0 = 8   # decoded path stored at output lanes [8, 8+T)


def _full_spec(shape):
    nd = len(shape)
    return pl.BlockSpec(shape, lambda i, nd=nd: (0,) * nd)


def _sigmoid(x):
    # sigmoid(x) = 0.5*(tanh(x/2)+1): transcendental stays on the EUP, no f32 VPU divide
    # inside the serial recurrence.
    return 0.5 * (jnp.tanh(0.5 * x) + 1.0)


# ----------------------------------------------------------------------------
# Fused kernel: (embedding+input proj) + BiLSTM + hidden2tag + Viterbi decode
# ----------------------------------------------------------------------------
def bilstm_crf_kernel(sent_ref, slab_ref, out_ref):
    Tn = sent_ref.shape[0]

    # ---- one-hot ids -> fused (embed @ w_ih) projection: single (T,V)@(V,8H) dot ----
    onehot = (lax.broadcasted_iota(jnp.int32, (Tn, VOCAB), 1) == sent_ref[...]
              ).astype(jnp.float32)                                      # (T, V)
    x_all = jnp.dot(onehot, slab_ref[ROW_EMW:ROW_EMW + VOCAB, :],
                    preferred_element_type=jnp.float32) \
        + slab_ref[ROW_B:ROW_B + 1, :]                                   # (T, 8H)

    # ---- hoist fwd/bwd gate-row selection off the serial chain ----------------------
    # Gate-column layout (each block H wide): [i_f i_b | f_f f_b | g_f g_b | o_f o_b]
    lane_g = lax.broadcasted_iota(jnp.int32, (1, G), 1)
    is_fwd = (lane_g % H2) < H
    x_rows = [jnp.where(is_fwd, x_all[s:s + 1, :], x_all[Tn - 1 - s:Tn - s, :])
              for s in range(Tn)]                                        # T x (1, 8H)

    # ---- interleaved fwd/bwd recurrence on the concatenated [h_f|h_b] ----------------
    whh = slab_ref[ROW_WHH:ROW_WHH + H2, :]                              # (2H, 8H)
    s0 = slab_ref[ROW_S0:ROW_S0 + 2, :]
    h = s0[0:1, 0:H2]                                                    # (1, 2H)
    c = s0[1:2, 0:H2]                                                    # (1, 2H)

    h_rows = []
    for s in range(Tn):
        g = x_rows[s] + jnp.dot(h, whh, preferred_element_type=jnp.float32)
        i_g = _sigmoid(g[:, 0:H2])
        f_g = _sigmoid(g[:, H2:2 * H2])
        g_g = jnp.tanh(g[:, 2 * H2:3 * H2])
        o_g = _sigmoid(g[:, 3 * H2:4 * H2])
        c = f_g * c + i_g * g_g
        h = o_g * jnp.tanh(c)
        h_rows.append(h)                       # full (1, 2H) row; no per-step sub-slicing

    # ---- build hcat once: hcat[t] = [h_f(t) | h_b(t)] --------------------------------
    lane_h2 = lax.broadcasted_iota(jnp.int32, (1, H2), 1)
    fwd_half = lane_h2 < H
    hcat = jnp.concatenate(
        [jnp.where(fwd_half, h_rows[t], h_rows[Tn - 1 - t]) for t in range(Tn)],
        axis=0)                                                          # (T, 2H)

    # ---- hidden2tag: single (T,2H)@(2H,128) dot (lane-dense, zero-padded beyond K) ---
    wht = slab_ref[ROW_WHT:ROW_WHT + H2, :]                              # (2H, 128)
    bht = slab_ref[ROW_BHT:ROW_BHT + 1, :]                               # (1, 128)
    feats_full = jnp.dot(hcat, wht, preferred_element_type=jnp.float32) + bht   # (T,128)
    feats = feats_full[:, 0:K]                                           # (T, K)

    # ---- Viterbi forward pass: alternate delta orientation (row/col) each step -------
    trans = slab_ref[ROW_TR:ROW_TR + K, :][:, 0:K]                       # (K, K) [prev,cur]
    transT = slab_ref[ROW_TRT:ROW_TRT + K, :][:, 0:K]                    # (K, K) [cur,prev]

    sub_kk = lax.broadcasted_iota(jnp.int32, (K, K), 0)
    lan_kk = lax.broadcasted_iota(jnp.int32, (K, K), 1)
    diag_kk = sub_kk == lan_kk
    sub_k1 = lax.broadcasted_iota(jnp.int32, (K, 1), 0)
    lan_1k = lax.broadcasted_iota(jnp.int32, (1, K), 1)

    def row_to_col(row):                      # (1,K) -> (K,1): diag select + lane max
        return jnp.max(jnp.where(diag_kk, jnp.broadcast_to(row, (K, K)), -jnp.inf),
                       axis=1, keepdims=True)

    # feats columns needed by column-producing (odd) steps: precomputed OFF the chain.
    feats_col = {t: row_to_col(feats[t:t + 1, :]) for t in range(1, Tn, 2)}

    delta = feats[0:1, :]                     # start as a (1,K) row
    bps = []
    for t in range(1, Tn):
        if t % 2 == 1:
            # delta is a row -> use trans^T; scores[cur,prev] = delta[prev] + trans[prev,cur]
            scores = delta + transT                                       # (K, K)
            best = jnp.max(scores, axis=1, keepdims=True)                 # (K, 1) by cur
            bp = jnp.min(jnp.where(scores == best, lan_kk, K),
                         axis=1, keepdims=True)                           # (K, 1) int32
            delta = best + feats_col[t]                                   # column
        else:
            # delta is a column -> use trans; scores[prev,cur] = delta[prev] + trans[prev,cur]
            scores = delta + trans                                        # (K, K)
            best = jnp.max(scores, axis=0, keepdims=True)                 # (1, K) by cur
            bp = jnp.min(jnp.where(scores == best, sub_kk, K),
                         axis=0, keepdims=True)                           # (1, K) int32
            delta = best + feats[t:t + 1, :]                              # row
        bps.append(bp)

    # ---- final best tag (orientation depends on parity of Tn-1) ----------------------
    if (Tn - 1) % 2 == 1:                     # delta is a (K,1) column
        dmax = jnp.max(delta, axis=0, keepdims=True)
        cur = jnp.min(jnp.where(delta == dmax, sub_k1, K), axis=0, keepdims=True)  # (1,1)
    else:                                     # delta is a (1,K) row
        dmax = jnp.max(delta, axis=1, keepdims=True)
        cur = jnp.min(jnp.where(delta == dmax, lan_1k, K), axis=1, keepdims=True)

    # ---- in-kernel backtrack, packed into lanes [8, 8+T) of the output tile ----------
    lane128 = lax.broadcasted_iota(jnp.int32, (1, G), 1)
    path_row = jnp.where(lane128 == PATH_LANE0 + Tn - 1,
                         cur.astype(jnp.float32), 0.0)                    # (1, 128)
    for t in range(Tn - 1, 0, -1):
        bp = bps[t - 1]
        if t % 2 == 1:                        # column bp (K,1) indexed by current tag
            pre = jnp.sum(jnp.where(sub_k1 == cur, bp, 0), axis=0, keepdims=True)
        else:                                 # row bp (1,K) indexed by current tag
            pre = jnp.sum(jnp.where(lan_1k == cur, bp, 0), axis=1, keepdims=True)
        path_row = jnp.where(lane128 == PATH_LANE0 + t - 1,
                             pre.astype(jnp.float32), path_row)
        cur = pre

    # ---- single lane-dense unmasked (8,128) store: feats in lanes 0..K-1, path in 8..15
    out_ref[...] = feats_full + path_row


# ----------------------------------------------------------------------------
# Parameter construction / one-time packing
# ----------------------------------------------------------------------------
def init_params(key):
    ks = jax.random.split(key, 14)

    def u(k, shape, scale):
        return jax.random.uniform(k, shape, jnp.float32, -scale, scale)

    s = 1.0 / np.sqrt(H)
    sl = 1.0 / np.sqrt(HIDDEN)
    return dict(
        embed=jax.random.normal(ks[0], (VOCAB, EMBED), jnp.float32),
        w_ih_f=u(ks[1], (4 * H, EMBED), s),
        w_hh_f=u(ks[2], (4 * H, H), s),
        b_ih_f=u(ks[3], (4 * H,), s),
        b_hh_f=u(ks[4], (4 * H,), s),
        w_ih_b=u(ks[5], (4 * H, EMBED), s),
        w_hh_b=u(ks[6], (4 * H, H), s),
        b_ih_b=u(ks[7], (4 * H,), s),
        b_hh_b=u(ks[8], (4 * H,), s),
        w_ht=u(ks[9], (TAGSET, HIDDEN), sl),
        b_ht=u(ks[10], (TAGSET,), sl),
        # Module __init__ zero-inits transitions; small random values used so the
        # CRF transition term actually exercises the Viterbi path.
        transitions=0.1 * jax.random.normal(ks[11], (TAGSET, TAGSET), jnp.float32),
        # TODO(synk): PyTorch re-randomizes init_hidden() on every forward; we fix
        # it at init time (deterministic), same semantic deviation as before.
        h0=jax.random.normal(ks[12], (2, 1, H), jnp.float32),
        c0=jax.random.normal(ks[13], (2, 1, H), jnp.float32),
    )


def pack_params(p):
    """One-time repack of PyTorch-layout weights into one lane-dense (128,128) f32 slab.

    Gate columns interleaved as [i_f i_b | f_f f_b | g_f g_b | o_f o_b] (blocks H wide);
    the embedding is folded into the input projection (emw = embed @ w_ih). Runs once
    outside the per-call path.
    """
    def interleave(a, b):                          # (R,4H),(R,4H) -> (R,8H)
        blocks = []
        for k in range(4):
            blocks.append(a[:, k * H:(k + 1) * H])
            blocks.append(b[:, k * H:(k + 1) * H])
        return jnp.concatenate(blocks, axis=1)

    zeros = jnp.zeros((H, 4 * H), jnp.float32)
    wih = interleave(p["w_ih_f"].T, p["w_ih_b"].T)                       # (E, 8H)
    emw = p["embed"] @ wih                                               # (V, 8H) fold embed
    whh = interleave(jnp.concatenate([p["w_hh_f"].T, zeros], axis=0),
                     jnp.concatenate([zeros, p["w_hh_b"].T], axis=0))    # (2H, 8H)
    b = interleave((p["b_ih_f"] + p["b_hh_f"])[None, :],
                   (p["b_ih_b"] + p["b_hh_b"])[None, :])                 # (1, 8H)
    state0 = jnp.concatenate(
        [jnp.concatenate([p["h0"][0], p["h0"][1]], axis=1),
         jnp.concatenate([p["c0"][0], p["c0"][1]], axis=1)], axis=0)     # (2, 2H)
    wht = p["w_ht"].T                                                    # (2H, K)
    bht = p["b_ht"][None, :]                                             # (1, K)
    trans = p["transitions"]                                             # (K, K)

    slab = jnp.zeros((SLAB_ROWS, 128), jnp.float32)

    def put(s, row, x):
        return s.at[row:row + x.shape[0], 0:x.shape[1]].set(x)

    slab = put(slab, ROW_EMW, emw)
    slab = put(slab, ROW_WHH, whh)
    slab = put(slab, ROW_B, b)
    slab = put(slab, ROW_S0, state0)
    slab = put(slab, ROW_WHT, wht)
    slab = put(slab, ROW_BHT, bht)
    slab = put(slab, ROW_TR, trans)
    slab = put(slab, ROW_TRT, trans.T)
    return slab


# ----------------------------------------------------------------------------
# Wrappers
# ----------------------------------------------------------------------------
@jax.jit
def bilstm_crf_call(slab, sent):
    args = (sent.astype(jnp.int32)[:, None], slab)
    out = pl.pallas_call(
        bilstm_crf_kernel,
        grid=(1,),
        in_specs=[_full_spec(a.shape) for a in args],
        out_specs=_full_spec((T, 128)),
        out_shape=jax.ShapeDtypeStruct((T, 128), jnp.float32),
        compiler_params=pltpu.CompilerParams(dimension_semantics=("arbitrary",)),
    )(*args)
    feats = out[:, :TAGSET]
    path = jnp.round(out[0, PATH_LANE0:PATH_LANE0 + T]).astype(jnp.int32)
    return feats, path


def forward(slab, sent):
    """Equivalent of BiLSTM_CRF.forward: returns the decoded tag path (list of ints)."""
    _, path = bilstm_crf_call(slab, sent)
    return [int(v) for v in np.asarray(jax.device_get(path))]


# ----------------------------------------------------------------------------
# Pure numpy references (for correctness check)
# ----------------------------------------------------------------------------
def ref_feats(params, sent):
    p = {k: np.asarray(v) for k, v in params.items()}
    embeds = p["embed"][np.asarray(sent)]

    def run_dir(wih, whh, bih, bhh, h0, c0, xs):
        h, c = h0.copy(), c0.copy()
        outs = []
        for x in xs:
            g = wih @ x + bih + whh @ h + bhh
            i = 1.0 / (1.0 + np.exp(-g[0:H]))
            f = 1.0 / (1.0 + np.exp(-g[H:2 * H]))
            gg = np.tanh(g[2 * H:3 * H])
            o = 1.0 / (1.0 + np.exp(-g[3 * H:4 * H]))
            c = f * c + i * gg
            h = o * np.tanh(c)
            outs.append(h)
        return outs

    hf = run_dir(p["w_ih_f"], p["w_hh_f"], p["b_ih_f"], p["b_hh_f"],
                 p["h0"][0, 0], p["c0"][0, 0], list(embeds))
    hb = run_dir(p["w_ih_b"], p["w_hh_b"], p["b_ih_b"], p["b_hh_b"],
                 p["h0"][1, 0], p["c0"][1, 0], list(embeds[::-1]))
    hb = hb[::-1]
    out = np.stack([np.concatenate([a, b]) for a, b in zip(hf, hb)])
    return out @ p["w_ht"].T + p["b_ht"]


def ref_decode(feats, trans):
    feats = np.asarray(feats)
    trans = np.asarray(trans)
    prev = feats[0]
    bps = []
    for obs in feats[1:]:
        scores = prev[:, None] + obs[None, :] + trans
        bps.append(np.argmax(scores, axis=0))
        prev = scores.max(axis=0)
    cur = int(np.argmax(prev))
    path = [cur]
    for bp in reversed(bps):
        cur = int(bp[cur])
        path.insert(0, cur)
    return path


if __name__ == "__main__":
    key = jax.random.PRNGKey(0)
    pkey, skey = jax.random.split(key)
    params = init_params(pkey)
    slab = pack_params(params)                         # one-time layout prep
    sent = jax.random.randint(skey, (T,), 0, VOCAB, dtype=jnp.int32)

    feats, path = bilstm_crf_call(slab, sent)
    jax.block_until_ready((feats, path))

    # correctness: LSTM + hidden2tag features
    np.testing.assert_allclose(np.asarray(feats), ref_feats(params, sent),
                               rtol=1e-3, atol=1e-3)

    # correctness: in-kernel Viterbi decode (full forward)
    decoded = [int(v) for v in np.asarray(path)]
    ref_path = ref_decode(np.asarray(feats), params["transitions"])
    assert len(decoded) == T and all(0 <= p_ < TAGSET for p_ in decoded)
    assert decoded == ref_path, (decoded, ref_path)
    assert decoded == forward(slab, sent)

    print("KERNEL_OK")
</pallas_src>

<mosaic_0001>
module attributes {stable_mosaic.version = 11 : i64} {
  func.func @bilstm_crf_kernel(%arg0: i32, %arg1: memref<8x1xi32, #tpu.memory_space<vmem>>, %arg2: memref<128x128xf32, #tpu.memory_space<vmem>>, %arg3: memref<8x128xf32, #tpu.memory_space<vmem>>) attributes {dimension_semantics = [#tpu.dimension_semantics<arbitrary>], iteration_bounds = array<i64: 1>, scalar_prefetch = 0 : i64, scratch_operands = 0 : i64, tpu.core_type = #tpu.core_type<tc>, window_params = [{pipeline_mode = #tpu.pipeline_mode<synchronous>, transform_indices = @transform_0, window_bounds = array<i64: 8, 1>}, {pipeline_mode = #tpu.pipeline_mode<synchronous>, transform_indices = @transform_1, window_bounds = array<i64: 128, 128>}, {pipeline_mode = #tpu.pipeline_mode<synchronous>, transform_indices = @transform_2, window_bounds = array<i64: 8, 128>}]} {
    %0 = tpu.iota {dimensions = array<i32: 1>} : vector<8x20xi32>
    %c0 = arith.constant 0 : index
    %c0_0 = arith.constant 0 : index
    %1 = vector.load %arg1[%c0, %c0_0] : memref<8x1xi32, #tpu.memory_space<vmem>>, vector<8x1xi32>
    %2 = vector.broadcast %1 : vector<8x1xi32> to vector<8x20xi32>
    %3 = arith.cmpi eq, %0, %2 : vector<8x20xi32>
    %4 = arith.extui %3 : vector<8x20xi1> to vector<8x20xi32>
    %5 = arith.sitofp %4 : vector<8x20xi32> to vector<8x20xf32>
    %c0_1 = arith.constant 0 : index
    %c0_2 = arith.constant 0 : index
    %6 = vector.load %arg2[%c0_1, %c0_2] : memref<128x128xf32, #tpu.memory_space<vmem>>, vector<20x128xf32>
    %cst = arith.constant dense<0.000000e+00> : vector<8x128xf32>
    %7 = tpu.matmul %5, %6, %cst {dimension_numbers = #tpu.dot_dimension_numbers<[1], [0], [0], [1], [0, 0, 1, 1], [], []>} : vector<8x20xf32>, vector<20x128xf32>, vector<8x128xf32> -> vector<8x128xf32>
    %c56 = arith.constant 56 : index
    %c0_3 = arith.constant 0 : index
    %8 = vector.load %arg2[%c56, %c0_3] : memref<128x128xf32, #tpu.memory_space<vmem>>, vector<1x128xf32>
    %9 = vector.broadcast %8 : vector<1x128xf32> to vector<8x128xf32>
    %10 = arith.addf %7, %9 : vector<8x128xf32>
    %11 = tpu.iota {dimensions = array<i32: 1>} : vector<1x128xi32>
    %c32_i32 = arith.constant 32 : i32
    %c0_i32 = arith.constant 0 : i32
    %12 = arith.cmpi eq, %c32_i32, %c0_i32 : i32
    %c1_i32 = arith.constant 1 : i32
    %13 = arith.select %12, %c1_i32, %c32_i32 : i32
    %14 = vector.broadcast %13 : i32 to vector<1x128xi32>
    %15 = arith.remsi %11, %14 : vector<1x128xi32>
    %c0_i32_4 = arith.constant 0 : i32
    %16 = vector.broadcast %c0_i32_4 : i32 to vector<1x128xi32>
    %17 = arith.cmpi ne, %15, %16 : vector<1x128xi32>
    %c0_i32_5 = arith.constant 0 : i32
    %18 = vector.broadcast %c0_i32_5 : i32 to vector<1x128xi32>
    %19 = arith.cmpi slt, %15, %18 : vector<1x128xi32>
    %c0_i32_6 = arith.constant 0 : i32
    %20 = arith.cmpi slt, %13, %c0_i32_6 : i32
    %21 = vector.broadcast %20 : i1 to vector<1x128xi1>
    %22 = vector.broadcast %21 : vector<1x128xi1> to vector<1x128xi1>
    %23 = arith.xori %19, %22 : vector<1x128xi1>
    %24 = arith.andi %23, %17 : vector<1x128xi1>
    %25 = vector.broadcast %13 : i32 to vector<1x128xi32>
    %26 = arith.addi %15, %25 : vector<1x128xi32>
    %27 = arith.select %24, %26, %15 : vector<1x128xi1>, vector<1x128xi32>
    %c16_i32 = arith.constant 16 : i32
    %28 = vector.broadcast %c16_i32 : i32 to vector<1x128xi32>
    %29 = arith.cmpi slt, %27, %28 : vector<1x128xi32>
    %30 = vector.extract_strided_slice %10 {offsets = [0, 0], sizes = [1, 128], strides = [1, 1]} : vector<8x128xf32> to vector<1x128xf32>
    %31 = vector.extract_strided_slice %10 {offsets = [7, 0], sizes = [1, 128], strides = [1, 1]} : vector<8x128xf32> to vector<1x128xf32>
    %32 = arith.select %29, %30, %31 : vector<1x128xi1>, vector<1x128xf32>
    %33 = vector.extract_strided_slice %10 {offsets = [1, 0], sizes = [1, 128], strides = [1, 1]} : vector<8x128xf32> to vector<1x128xf32>
    %34 = vector.extract_strided_slice %10 {offsets = [6, 0], sizes = [1, 128], strides = [1, 1]} : vector<8x128xf32> to vector<1x128xf32>
    %35 = arith.select %29, %33, %34 : vector<1x128xi1>, vector<1x128xf32>
    %36 = vector.extract_strided_slice %10 {offsets = [2, 0], sizes = [1, 128], strides = [1, 1]} : vector<8x128xf32> to vector<1x128xf32>
    %37 = vector.extract_strided_slice %10 {offsets = [5, 0], sizes = [1, 128], strides = [1, 1]} : vector<8x128xf32> to vector<1x128xf32>
    %38 = arith.select %29, %36, %37 : vector<1x128xi1>, vector<1x128xf32>
    %39 = vector.extract_strided_slice %10 {offsets = [3, 0], sizes = [1, 128], strides = [1, 1]} : vector<8x128xf32> to vector<1x128xf32>
    %40 = vector.extract_strided_slice %10 {offsets = [4, 0], sizes = [1, 128], strides = [1, 1]} : vector<8x128xf32> to vector<1x128xf32>
    %41 = arith.select %29, %39, %40 : vector<1x128xi1>, vector<1x128xf32>
    %42 = vector.extract_strided_slice %10 {offsets = [4, 0], sizes = [1, 128], strides = [1, 1]} : vector<8x128xf32> to vector<1x128xf32>
    %43 = vector.extract_strided_slice %10 {offsets = [3, 0], sizes = [1, 128], strides = [1, 1]} : vector<8x128xf32> to vector<1x128xf32>
    %44 = arith.select %29, %42, %43 : vector<1x128xi1>, vector<1x128xf32>
    %45 = vector.extract_strided_slice %10 {offsets = [5, 0], sizes = [1, 128], strides = [1, 1]} : vector<8x128xf32> to vector<1x128xf32>
    %46 = vector.extract_strided_slice %10 {offsets = [2, 0], sizes = [1, 128], strides = [1, 1]} : vector<8x128xf32> to vector<1x128xf32>
    %47 = arith.select %29, %45, %46 : vector<1x128xi1>, vector<1x128xf32>
    %48 = vector.extract_strided_slice %10 {offsets = [6, 0], sizes = [1, 128], strides = [1, 1]} : vector<8x128xf32> to vector<1x128xf32>
    %49 = vector.extract_strided_slice %10 {offsets = [1, 0], sizes = [1, 128], strides = [1, 1]} : vector<8x128xf32> to vector<1x128xf32>
    %50 = arith.select %29, %48, %49 : vector<1x128xi1>, vector<1x128xf32>
    %51 = vector.extract_strided_slice %10 {offsets = [7, 0], sizes = [1, 128], strides = [1, 1]} : vector<8x128xf32> to vector<1x128xf32>
    %52 = vector.extract_strided_slice %10 {offsets = [0, 0], sizes = [1, 128], strides = [1, 1]} : vector<8x128xf32> to vector<1x128xf32>
    %53 = arith.select %29, %51, %52 : vector<1x128xi1>, vector<1x128xf32>
    %c24 = arith.constant 24 : index
    %c0_7 = arith.constant 0 : index
    %54 = vector.load %arg2[%c24, %c0_7] : memref<128x128xf32, #tpu.memory_space<vmem>>, vector<32x128xf32>
    %c64 = arith.constant 64 : index
    %c0_8 = arith.constant 0 : index
    %55 = vector.load %arg2[%c64, %c0_8] : memref<128x128xf32, #tpu.memory_space<vmem>>, vector<2x128xf32>
    %56 = vector.extract_strided_slice %55 {offsets = [0, 0], sizes = [1, 32], strides = [1, 1]} : vector<2x128xf32> to vector<1x32xf32>
    %57 = vector.extract_strided_slice %55 {offsets = [1, 0], sizes = [1, 32], strides = [1, 1]} : vector<2x128xf32> to vector<1x32xf32>
    %cst_9 = arith.constant dense<0.000000e+00> : vector<1x128xf32>
    %58 = tpu.matmul %56, %54, %cst_9 {dimension_numbers = #tpu.dot_dimension_numbers<[1], [0], [0], [1], [0, 0, 1, 1], [], []>} : vector<1x32xf32>, vector<32x128xf32>, vector<1x128xf32> -> vector<1x128xf32>
    %59 = arith.addf %32, %58 : vector<1x128xf32>
    %60 = vector.extract_strided_slice %59 {offsets = [0, 0], sizes = [1, 32], strides = [1, 1]} : vector<1x128xf32> to vector<1x32xf32>
    %cst_10 = arith.constant 5.000000e-01 : f32
    %61 = vector.broadcast %cst_10 : f32 to vector<1x32xf32>
    %62 = arith.mulf %61, %60 : vector<1x32xf32>
    %63 = math.tanh %62 : vector<1x32xf32>
    %cst_11 = arith.constant 1.000000e+00 : f32
    %64 = vector.broadcast %cst_11 : f32 to vector<1x32xf32>
    %65 = arith.addf %63, %64 : vector<1x32xf32>
    %cst_12 = arith.constant 5.000000e-01 : f32
    %66 = vector.broadcast %cst_12 : f32 to vector<1x32xf32>
    %67 = arith.mulf %66, %65 : vector<1x32xf32>
    %68 = vector.extract_strided_slice %59 {offsets = [0, 32], sizes = [1, 32], strides = [1, 1]} : vector<1x128xf32> to vector<1x32xf32>
    %cst_13 = arith.constant 5.000000e-01 : f32
    %69 = vector.broadcast %cst_13 : f32 to vector<1x32xf32>
    %70 = arith.mulf %69, %68 : vector<1x32xf32>
    %71 = math.tanh %70 : vector<1x32xf32>
    %cst_14 = arith.constant 1.000000e+00 : f32
    %72 = vector.broadcast %cst_14 : f32 to vector<1x32xf32>
    %73 = arith.addf %71, %72 : vector<1x32xf32>
    %cst_15 = arith.constant 5.000000e-01 : f32
    %74 = vector.broadcast %cst_15 : f32 to vector<1x32xf32>
    %75 = arith.mulf %74, %73 : vector<1x32xf32>
    %76 = vector.extract_strided_slice %59 {offsets = [0, 64], sizes = [1, 32], strides = [1, 1]} : vector<1x128xf32> to vector<1x32xf32>
    %77 = math.tanh %76 : vector<1x32xf32>
    %78 = vector.extract_strided_slice %59 {offsets = [0, 96], sizes = [1, 32], strides = [1, 1]} : vector<1x128xf32> to vector<1x32xf32>
    %cst_16 = arith.constant 5.000000e-01 : f32
    %79 = vector.broadcast %cst_16 : f32 to vector<1x32xf32>
    %80 = arith.mulf %79, %78 : vector<1x32xf32>
    %81 = math.tanh %80 : vector<1x32xf32>
    %cst_17 = arith.constant 1.000000e+00 : f32
    %82 = vector.broadcast %cst_17 : f32 to vector<1x32xf32>
    %83 = arith.addf %81, %82 : vector<1x32xf32>
    %cst_18 = arith.constant 5.000000e-01 : f32
    %84 = vector.broadcast %cst_18 : f32 to vector<1x32xf32>
    %85 = arith.mulf %84, %83 : vector<1x32xf32>
    %86 = arith.mulf %75, %57 : vector<1x32xf32>
    %87 = arith.mulf %67, %77 : vector<1x32xf32>
    %88 = arith.addf %86, %87 : vector<1x32xf32>
    %89 = math.tanh %88 : vector<1x32xf32>
    %90 = arith.mulf %85, %89 : vector<1x32xf32>
    %cst_19 = arith.constant dense<0.000000e+00> : vector<1x128xf32>
    %91 = tpu.matmul %90, %54, %cst_19 {dimension_numbers = #tpu.dot_dimension_numbers<[1], [0], [0], [1], [0, 0, 1, 1], [], []>} : vector<1x32xf32>, vector<32x128xf32>, vector<1x128xf32> -> vector<1x128xf32>
    %92 = arith.addf %35, %91 : vector<1x128xf32>
    %93 = vector.extract_strided_slice %92 {offsets = [0, 0], sizes = [1, 32], strides = [1, 1]} : vector<1x128xf32> to vector<1x32xf32>
    %cst_20 = arith.constant 5.000000e-01 : f32
    %94 = vector.broadcast %cst_20 : f32 to vector<1x32xf32>
    %95 = arith.mulf %94, %93 : vector<1x32xf32>
    %96 = math.tanh %95 : vector<1x32xf32>
    %cst_21 = arith.constant 1.000000e+00 : f32
    %97 = vector.broadcast %cst_21 : f32 to vector<1x32xf32>
    %98 = arith.addf %96, %97 : vector<1x32xf32>
    %cst_22 = arith.constant 5.000000e-01 : f32
    %99 = vector.broadcast %cst_22 : f32 to vector<1x32xf32>
    %100 = arith.mulf %99, %98 : vector<1x32xf32>
    %101 = vector.extract_strided_slice %92 {offsets = [0, 32], sizes = [1, 32], strides = [1, 1]} : vector<1x128xf32> to vector<1x32xf32>
    %cst_23 = arith.constant 5.000000e-01 : f32
    %102 = vector.broadcast %cst_23 : f32 to vector<1x32xf32>
    %103 = arith.mulf %102, %101 : vector<1x32xf32>
    %104 = math.tanh %103 : vector<1x32xf32>
    %cst_24 = arith.constant 1.000000e+00 : f32
    %105 = vector.broadcast %cst_24 : f32 to vector<1x32xf32>
    %106 = arith.addf %104, %105 : vector<1x32xf32>
    %cst_25 = arith.constant 5.000000e-01 : f32
    %107 = vector.broadcast %cst_25 : f32 to vector<1x32xf32>
    %108 = arith.mulf %107, %106 : vector<1x32xf32>
    %109 = vector.extract_strided_slice %92 {offsets = [0, 64], sizes = [1, 32], strides = [1, 1]} : vector<1x128xf32> to vector<1x32xf32>
    %110 = math.tanh %109 : vector<1x32xf32>
    %111 = vector.extract_strided_slice %92 {offsets = [0, 96], sizes = [1, 32], strides = [1, 1]} : vector<1x128xf32> to vector<1x32xf32>
    %cst_26 = arith.constant 5.000000e-01 : f32
    %112 = vector.broadcast %cst_26 : f32 to vector<1x32xf32>
    %113 = arith.mulf %112, %111 : vector<1x32xf32>
    %114 = math.tanh %113 : vector<1x32xf32>
    %cst_27 = arith.constant 1.000000e+00 : f32
    %115 = vector.broadcast %cst_27 : f32 to vector<1x32xf32>
    %116 = arith.addf %114, %115 : vector<1x32xf32>
    %cst_28 = arith.constant 5.000000e-01 : f32
    %117 = vector.broadcast %cst_28 : f32 to vector<1x32xf32>
    %118 = arith.mulf %117, %116 : vector<1x32xf32>
    %119 = arith.mulf %108, %88 : vector<1x32xf32>
    %120 = arith.mulf %100, %110 : vector<1x32xf32>
    %121 = arith.addf %119, %120 : vector<1x32xf32>
    %122 = math.tanh %121 : vector<1x32xf32>
    %123 = arith.mulf %118, %122 : vector<1x32xf32>
    %cst_29 = arith.constant dense<0.000000e+00> : vector<1x128xf32>
    %124 = tpu.matmul %123, %54, %cst_29 {dimension_numbers = #tpu.dot_dimension_numbers<[1], [0], [0], [1], [0, 0, 1, 1], [], []>} : vector<1x32xf32>, vector<32x128xf32>, vector<1x128xf32> -> vector<1x128xf32>
    %125 = arith.addf %38, %124 : vector<1x128xf32>
    %126 = vector.extract_strided_slice %125 {offsets = [0, 0], sizes = [1, 32], strides = [1, 1]} : vector<1x128xf32> to vector<1x32xf32>
    %cst_30 = arith.constant 5.000000e-01 : f32
    %127 = vector.broadcast %cst_30 : f32 to vector<1x32xf32>
    %128 = arith.mulf %127, %126 : vector<1x32xf32>
    %129 = math.tanh %128 : vector<1x32xf32>
    %cst_31 = arith.constant 1.000000e+00 : f32
    %130 = vector.broadcast %cst_31 : f32 to vector<1x32xf32>
    %131 = arith.addf %129, %130 : vector<1x32xf32>
    %cst_32 = arith.constant 5.000000e-01 : f32
    %132 = vector.broadcast %cst_32 : f32 to vector<1x32xf32>
    %133 = arith.mulf %132, %131 : vector<1x32xf32>
    %134 = vector.extract_strided_slice %125 {offsets = [0, 32], sizes = [1, 32], strides = [1, 1]} : vector<1x128xf32> to vector<1x32xf32>
    %cst_33 = arith.constant 5.000000e-01 : f32
    %135 = vector.broadcast %cst_33 : f32 to vector<1x32xf32>
    %136 = arith.mulf %135, %134 : vector<1x32xf32>
    %137 = math.tanh %136 : vector<1x32xf32>
    %cst_34 = arith.constant 1.000000e+00 : f32
    %138 = vector.broadcast %cst_34 : f32 to vector<1x32xf32>
    %139 = arith.addf %137, %138 : vector<1x32xf32>
    %cst_35 = arith.constant 5.000000e-01 : f32
    %140 = vector.broadcast %cst_35 : f32 to vector<1x32xf32>
    %141 = arith.mulf %140, %139 : vector<1x32xf32>
    %142 = vector.extract_strided_slice %125 {offsets = [0, 64], sizes = [1, 32], strides = [1, 1]} : vector<1x128xf32> to vector<1x32xf32>
    %143 = math.tanh %142 : vector<1x32xf32>
    %144 = vector.extract_strided_slice %125 {offsets = [0, 96], sizes = [1, 32], strides = [1, 1]} : vector<1x128xf32> to vector<1x32xf32>
    %cst_36 = arith.constant 5.000000e-01 : f32
    %145 = vector.broadcast %cst_36 : f32 to vector<1x32xf32>
    %146 = arith.mulf %145, %144 : vector<1x32xf32>
    %147 = math.tanh %146 : vector<1x32xf32>
    %cst_37 = arith.constant 1.000000e+00 : f32
    %148 = vector.broadcast %cst_37 : f32 to vector<1x32xf32>
    %149 = arith.addf %147, %148 : vector<1x32xf32>
    %cst_38 = arith.constant 5.000000e-01 : f32
    %150 = vector.broadcast %cst_38 : f32 to vector<1x32xf32>
    %151 = arith.mulf %150, %149 : vector<1x32xf32>
    %152 = arith.mulf %141, %121 : vector<1x32xf32>
    %153 = arith.mulf %133, %143 : vector<1x32xf32>
    %154 = arith.addf %152, %153 : vector<1x32xf32>
    %155 = math.tanh %154 : vector<1x32xf32>
    %156 = arith.mulf %151, %155 : vector<1x32xf32>
    %cst_39 = arith.constant dense<0.000000e+00> : vector<1x128xf32>
    %157 = tpu.matmul %156, %54, %cst_39 {dimension_numbers = #tpu.dot_dimension_numbers<[1], [0], [0], [1], [0, 0, 1, 1], [], []>} : vector<1x32xf32>, vector<32x128xf32>, vector<1x128xf32> -> vector<1x128xf32>
    %158 = arith.addf %41, %157 : vector<1x128xf32>
    %159 = vector.extract_strided_slice %158 {offsets = [0, 0], sizes = [1, 32], strides = [1, 1]} : vector<1x128xf32> to vector<1x32xf32>
    %cst_40 = arith.constant 5.000000e-01 : f32
    %160 = vector.broadcast %cst_40 : f32 to vector<1x32xf32>
    %161 = arith.mulf %160, %159 : vector<1x32xf32>
    %162 = math.tanh %161 : vector<1x32xf32>
    %cst_41 = arith.constant 1.000000e+00 : f32
    %163 = vector.broadcast %cst_41 : f32 to vector<1x32xf32>
    %164 = arith.addf %162, %163 : vector<1x32xf32>
    %cst_42 = arith.constant 5.000000e-01 : f32
    %165 = vector.broadcast %cst_42 : f32 to vector<1x32xf32>
    %166 = arith.mulf %165, %164 : vector<1x32xf32>
    %167 = vector.extract_strided_slice %158 {offsets = [0, 32], sizes = [1, 32], strides = [1, 1]} : vector<1x128xf32> to vector<1x32xf32>
    %cst_43 = arith.constant 5.000000e-01 : f32
    %168 = vector.broadcast %cst_43 : f32 to vector<1x32xf32>
    %169 = arith.mulf %168, %167 : vector<1x32xf32>
    %170 = math.tanh %169 : vector<1x32xf32>
    %cst_44 = arith.constant 1.000000e+00 : f32
    %171 = vector.broadcast %cst_44 : f32 to vector<1x32xf32>
    %172 = arith.addf %170, %171 : vector<1x32xf32>
    %cst_45 = arith.constant 5.000000e-01 : f32
    %173 = vector.broadcast %cst_45 : f32 to vector<1x32xf32>
    %174 = arith.mulf %173, %172 : vector<1x32xf32>
    %175 = vector.extract_strided_slice %158 {offsets = [0, 64], sizes = [1, 32], strides = [1, 1]} : vector<1x128xf32> to vector<1x32xf32>
    %176 = math.tanh %175 : vector<1x32xf32>
    %177 = vector.extract_strided_slice %158 {offsets = [0, 96], sizes = [1, 32], strides = [1, 1]} : vector<1x128xf32> to vector<1x32xf32>
    %cst_46 = arith.constant 5.000000e-01 : f32
    %178 = vector.broadcast %cst_46 : f32 to vector<1x32xf32>
    %179 = arith.mulf %178, %177 : vector<1x32xf32>
    %180 = math.tanh %179 : vector<1x32xf32>
    %cst_47 = arith.constant 1.000000e+00 : f32
    %181 = vector.broadcast %cst_47 : f32 to vector<1x32xf32>
    %182 = arith.addf %180, %181 : vector<1x32xf32>
    %cst_48 = arith.constant 5.000000e-01 : f32
    %183 = vector.broadcast %cst_48 : f32 to vector<1x32xf32>
    %184 = arith.mulf %183, %182 : vector<1x32xf32>
    %185 = arith.mulf %174, %154 : vector<1x32xf32>
    %186 = arith.mulf %166, %176 : vector<1x32xf32>
    %187 = arith.addf %185, %186 : vector<1x32xf32>
    %188 = math.tanh %187 : vector<1x32xf32>
    %189 = arith.mulf %184, %188 : vector<1x32xf32>
    %cst_49 = arith.constant dense<0.000000e+00> : vector<1x128xf32>
    %190 = tpu.matmul %189, %54, %cst_49 {dimension_numbers = #tpu.dot_dimension_numbers<[1], [0], [0], [1], [0, 0, 1, 1], [], []>} : vector<1x32xf32>, vector<32x128xf32>, vector<1x128xf32> -> vector<1x128xf32>
    %191 = arith.addf %44, %190 : vector<1x128xf32>
    %192 = vector.extract_strided_slice %191 {offsets = [0, 0], sizes = [1, 32], strides = [1, 1]} : vector<1x128xf32> to vector<1x32xf32>
    %cst_50 = arith.constant 5.000000e-01 : f32
    %193 = vector.broadcast %cst_50 : f32 to vector<1x32xf32>
    %194 = arith.mulf %193, %192 : vector<1x32xf32>
    %195 = math.tanh %194 : vector<1x32xf32>
    %cst_51 = arith.constant 1.000000e+00 : f32
    %196 = vector.broadcast %cst_51 : f32 to vector<1x32xf32>
    %197 = arith.addf %195, %196 : vector<1x32xf32>
    %cst_52 = arith.constant 5.000000e-01 : f32
    %198 = vector.broadcast %cst_52 : f32 to vector<1x32xf32>
    %199 = arith.mulf %198, %197 : vector<1x32xf32>
    %200 = vector.extract_strided_slice %191 {offsets = [0, 32], sizes = [1, 32], strides = [1, 1]} : vector<1x128xf32> to vector<1x32xf32>
    %cst_53 = arith.constant 5.000000e-01 : f32
    %201 = vector.broadcast %cst_53 : f32 to vector<1x32xf32>
    %202 = arith.mulf %201, %200 : vector<1x32xf32>
    %203 = math.tanh %202 : vector<1x32xf32>
    %cst_54 = arith.constant 1.000000e+00 : f32
    %204 = vector.broadcast %cst_54 : f32 to vector<1x32xf32>
    %205 = arith.addf %203, %204 : vector<1x32xf32>
    %cst_55 = arith.constant 5.000000e-01 : f32
    %206 = vector.broadcast %cst_55 : f32 to vector<1x32xf32>
    %207 = arith.mulf %206, %205 : vector<1x32xf32>
    %208 = vector.extract_strided_slice %191 {offsets = [0, 64], sizes = [1, 32], strides = [1, 1]} : vector<1x128xf32> to vector<1x32xf32>
    %209 = math.tanh %208 : vector<1x32xf32>
    %210 = vector.extract_strided_slice %191 {offsets = [0, 96], sizes = [1, 32], strides = [1, 1]} : vector<1x128xf32> to vector<1x32xf32>
    %cst_56 = arith.constant 5.000000e-01 : f32
    %211 = vector.broadcast %cst_56 : f32 to vector<1x32xf32>
    %212 = arith.mulf %211, %210 : vector<1x32xf32>
    %213 = math.tanh %212 : vector<1x32xf32>
    %cst_57 = arith.constant 1.000000e+00 : f32
    %214 = vector.broadcast %cst_57 : f32 to vector<1x32xf32>
    %215 = arith.addf %213, %214 : vector<1x32xf32>
    %cst_58 = arith.constant 5.000000e-01 : f32
    %216 = vector.broadcast %cst_58 : f32 to vector<1x32xf32>
    %217 = arith.mulf %216, %215 : vector<1x32xf32>
    %218 = arith.mulf %207, %187 : vector<1x32xf32>
    %219 = arith.mulf %199, %209 : vector<1x32xf32>
    %220 = arith.addf %218, %219 : vector<1x32xf32>
    %221 = math.tanh %220 : vector<1x32xf32>
    %222 = arith.mulf %217, %221 : vector<1x32xf32>
    %cst_59 = arith.constant dense<0.000000e+00> : vector<1x128xf32>
    %223 = tpu.matmul %222, %54, %cst_59 {dimension_numbers = #tpu.dot_dimension_numbers<[1], [0], [0], [1], [0, 0, 1, 1], [], []>} : vector<1x32xf32>, vector<32x128xf32>, vector<1x128xf32> -> vector<1x128xf32>
    %224 = arith.addf %47, %223 : vector<1x128xf32>
    %225 = vector.extract_strided_slice %224 {offsets = [0, 0], sizes = [1, 32], strides = [1, 1]} : vector<1x128xf32> to vector<1x32xf32>
    %cst_60 = arith.constant 5.000000e-01 : f32
    %226 = vector.broadcast %cst_60 : f32 to vector<1x32xf32>
    %227 = arith.mulf %226, %225 : vector<1x32xf32>
    %228 = math.tanh %227 : vector<1x32xf32>
    %cst_61 = arith.constant 1.000000e+00 : f32
    %229 = vector.broadcast %cst_61 : f32 to vector<1x32xf32>
    %230 = arith.addf %228, %229 : vector<1x32xf32>
    %cst_62 = arith.constant 5.000000e-01 : f32
    %231 = vector.broadcast %cst_62 : f32 to vector<1x32xf32>
    %232 = arith.mulf %231, %230 : vector<1x32xf32>
    %233 = vector.extract_strided_slice %224 {offsets = [0, 32], sizes = [1, 32], strides = [1, 1]} : vector<1x128xf32> to vector<1x32xf32>
    %cst_63 = arith.constant 5.000000e-01 : f32
    %234 = vector.broadcast %cst_63 : f32 to vector<1x32xf32>
    %235 = arith.mulf %234, %233 : vector<1x32xf32>
    %236 = math.tanh %235 : vector<1x32xf32>
    %cst_64 = arith.constant 1.000000e+00 : f32
    %237 = vector.broadcast %cst_64 : f32 to vector<1x32xf32>
    %238 = arith.addf %236, %237 : vector<1x32xf32>
    %cst_65 = arith.constant 5.000000e-01 : f32
    %239 = vector.broadcast %cst_65 : f32 to vector<1x32xf32>
    %240 = arith.mulf %239, %238 : vector<1x32xf32>
    %241 = vector.extract_strided_slice %224 {offsets = [0, 64], sizes = [1, 32], strides = [1, 1]} : vector<1x128xf32> to vector<1x32xf32>
    %242 = math.tanh %241 : vector<1x32xf32>
    %243 = vector.extract_strided_slice %224 {offsets = [0, 96], sizes = [1, 32], strides = [1, 1]} : vector<1x128xf32> to vector<1x32xf32>
    %cst_66 = arith.constant 5.000000e-01 : f32
    %244 = vector.broadcast %cst_66 : f32 to vector<1x32xf32>
    %245 = arith.mulf %244, %243 : vector<1x32xf32>
    %246 = math.tanh %245 : vector<1x32xf32>
    %cst_67 = arith.constant 1.000000e+00 : f32
    %247 = vector.broadcast %cst_67 : f32 to vector<1x32xf32>
    %248 = arith.addf %246, %247 : vector<1x32xf32>
    %cst_68 = arith.constant 5.000000e-01 : f32
    %249 = vector.broadcast %cst_68 : f32 to vector<1x32xf32>
    %250 = arith.mulf %249, %248 : vector<1x32xf32>
    %251 = arith.mulf %240, %220 : vector<1x32xf32>
    %252 = arith.mulf %232, %242 : vector<1x32xf32>
    %253 = arith.addf %251, %252 : vector<1x32xf32>
    %254 = math.tanh %253 : vector<1x32xf32>
    %255 = arith.mulf %250, %254 : vector<1x32xf32>
    %cst_69 = arith.constant dense<0.000000e+00> : vector<1x128xf32>
    %256 = tpu.matmul %255, %54, %cst_69 {dimension_numbers = #tpu.dot_dimension_numbers<[1], [0], [0], [1], [0, 0, 1, 1], [], []>} : vector<1x32xf32>, vector<32x128xf32>, vector<1x128xf32> -> vector<1x128xf32>
    %257 = arith.addf %50, %256 : vector<1x128xf32>
    %258 = vector.extract_strided_slice %257 {offsets = [0, 0], sizes = [1, 32], strides = [1, 1]} : vector<1x128xf32> to vector<1x32xf32>
    %cst_70 = arith.constant 5.000000e-01 : f32
    %259 = vector.broadcast %cst_70 : f32 to vector<1x32xf32>
    %260 = arith.mulf %259, %258 : vector<1x32xf32>
    %261 = math.tanh %260 : vector<1x32xf32>
    %cst_71 = arith.constant 1.000000e+00 : f32
    %262 = vector.broadcast %cst_71 : f32 to vector<1x32xf32>
    %263 = arith.addf %261, %262 : vector<1x32xf32>
    %cst_72 = arith.constant 5.000000e-01 : f32
    %264 = vector.broadcast %cst_72 : f32 to vector<1x32xf32>
    %265 = arith.mulf %264, %263 : vector<1x32xf32>
    %266 = vector.extract_strided_slice %257 {offsets = [0, 32], sizes = [1, 32], strides = [1, 1]} : vector<1x128xf32> to vector<1x32xf32>
    %cst_73 = arith.constant 5.000000e-01 : f32
    %267 = vector.broadcast %cst_73 : f32 to vector<1x32xf32>
    %268 = arith.mulf %267, %266 : vector<1x32xf32>
    %269 = math.tanh %268 : vector<1x32xf32>
    %cst_74 = arith.constant 1.000000e+00 : f32
    %270 = vector.broadcast %cst_74 : f32 to vector<1x32xf32>
    %271 = arith.addf %269, %270 : vector<1x32xf32>
    %cst_75 = arith.constant 5.000000e-01 : f32
    %272 = vector.broadcast %cst_75 : f32 to vector<1x32xf32>
    %273 = arith.mulf %272, %271 : vector<1x32xf32>
    %274 = vector.extract_strided_slice %257 {offsets = [0, 64], sizes = [1, 32], strides = [1, 1]} : vector<1x128xf32> to vector<1x32xf32>
    %275 = math.tanh %274 : vector<1x32xf32>
    %276 = vector.extract_strided_slice %257 {offsets = [0, 96], sizes = [1, 32], strides = [1, 1]} : vector<1x128xf32> to vector<1x32xf32>
    %cst_76 = arith.constant 5.000000e-01 : f32
    %277 = vector.broadcast %cst_76 : f32 to vector<1x32xf32>
    %278 = arith.mulf %277, %276 : vector<1x32xf32>
    %279 = math.tanh %278 : vector<1x32xf32>
    %cst_77 = arith.constant 1.000000e+00 : f32
    %280 = vector.broadcast %cst_77 : f32 to vector<1x32xf32>
    %281 = arith.addf %279, %280 : vector<1x32xf32>
    %cst_78 = arith.constant 5.000000e-01 : f32
    %282 = vector.broadcast %cst_78 : f32 to vector<1x32xf32>
    %283 = arith.mulf %282, %281 : vector<1x32xf32>
    %284 = arith.mulf %273, %253 : vector<1x32xf32>
    %285 = arith.mulf %265, %275 : vector<1x32xf32>
    %286 = arith.addf %284, %285 : vector<1x32xf32>
    %287 = math.tanh %286 : vector<1x32xf32>
    %288 = arith.mulf %283, %287 : vector<1x32xf32>
    %cst_79 = arith.constant dense<0.000000e+00> : vector<1x128xf32>
    %289 = tpu.matmul %288, %54, %cst_79 {dimension_numbers = #tpu.dot_dimension_numbers<[1], [0], [0], [1], [0, 0, 1, 1], [], []>} : vector<1x32xf32>, vector<32x128xf32>, vector<1x128xf32> -> vector<1x128xf32>
    %290 = arith.addf %53, %289 : vector<1x128xf32>
    %291 = vector.extract_strided_slice %290 {offsets = [0, 0], sizes = [1, 32], strides = [1, 1]} : vector<1x128xf32> to vector<1x32xf32>
    %cst_80 = arith.constant 5.000000e-01 : f32
    %292 = vector.broadcast %cst_80 : f32 to vector<1x32xf32>
    %293 = arith.mulf %292, %291 : vector<1x32xf32>
    %294 = math.tanh %293 : vector<1x32xf32>
    %cst_81 = arith.constant 1.000000e+00 : f32
    %295 = vector.broadcast %cst_81 : f32 to vector<1x32xf32>
    %296 = arith.addf %294, %295 : vector<1x32xf32>
    %cst_82 = arith.constant 5.000000e-01 : f32
    %297 = vector.broadcast %cst_82 : f32 to vector<1x32xf32>
    %298 = arith.mulf %297, %296 : vector<1x32xf32>
    %299 = vector.extract_strided_slice %290 {offsets = [0, 32], sizes = [1, 32], strides = [1, 1]} : vector<1x128xf32> to vector<1x32xf32>
    %cst_83 = arith.constant 5.000000e-01 : f32
    %300 = vector.broadcast %cst_83 : f32 to vector<1x32xf32>
    %301 = arith.mulf %300, %299 : vector<1x32xf32>
    %302 = math.tanh %301 : vector<1x32xf32>
    %cst_84 = arith.constant 1.000000e+00 : f32
    %303 = vector.broadcast %cst_84 : f32 to vector<1x32xf32>
    %304 = arith.addf %302, %303 : vector<1x32xf32>
    %cst_85 = arith.constant 5.000000e-01 : f32
    %305 = vector.broadcast %cst_85 : f32 to vector<1x32xf32>
    %306 = arith.mulf %305, %304 : vector<1x32xf32>
    %307 = vector.extract_strided_slice %290 {offsets = [0, 64], sizes = [1, 32], strides = [1, 1]} : vector<1x128xf32> to vector<1x32xf32>
    %308 = math.tanh %307 : vector<1x32xf32>
    %309 = vector.extract_strided_slice %290 {offsets = [0, 96], sizes = [1, 32], strides = [1, 1]} : vector<1x128xf32> to vector<1x32xf32>
    %cst_86 = arith.constant 5.000000e-01 : f32
    %310 = vector.broadcast %cst_86 : f32 to vector<1x32xf32>
    %311 = arith.mulf %310, %309 : vector<1x32xf32>
    %312 = math.tanh %311 : vector<1x32xf32>
    %cst_87 = arith.constant 1.000000e+00 : f32
    %313 = vector.broadcast %cst_87 : f32 to vector<1x32xf32>
    %314 = arith.addf %312, %313 : vector<1x32xf32>
    %cst_88 = arith.constant 5.000000e-01 : f32
    %315 = vector.broadcast %cst_88 : f32 to vector<1x32xf32>
    %316 = arith.mulf %315, %314 : vector<1x32xf32>
    %317 = arith.mulf %306, %286 : vector<1x32xf32>
    %318 = arith.mulf %298, %308 : vector<1x32xf32>
    %319 = arith.addf %317, %318 : vector<1x32xf32>
    %320 = math.tanh %319 : vector<1x32xf32>
    %321 = arith.mulf %316, %320 : vector<1x32xf32>
    %322 = tpu.iota {dimensions = array<i32: 1>} : vector<1x32xi32>
    %c16_i32_89 = arith.constant 16 : i32
    %323 = vector.broadcast %c16_i32_89 : i32 to vector<1x32xi32>
    %324 = arith.cmpi slt, %322, %323 : vector<1x32xi32>
    %325 = arith.select %324, %90, %321 : vector<1x32xi1>, vector<1x32xf32>
    %326 = arith.select %324, %123, %288 : vector<1x32xi1>, vector<1x32xf32>
    %327 = arith.select %324, %156, %255 : vector<1x32xi1>, vector<1x32xf32>
    %328 = arith.select %324, %189, %222 : vector<1x32xi1>, vector<1x32xf32>
    %329 = arith.select %324, %222, %189 : vector<1x32xi1>, vector<1x32xf32>
    %330 = arith.select %324, %255, %156 : vector<1x32xi1>, vector<1x32xf32>
    %331 = arith.select %324, %288, %123 : vector<1x32xi1>, vector<1x32xf32>
    %332 = arith.select %324, %321, %90 : vector<1x32xi1>, vector<1x32xf32>
    %333 = tpu.concatenate %325, %326, %327, %328, %329, %330, %331, %332 in 0 : vector<1x32xf32>, vector<1x32xf32>, vector<1x32xf32>, vector<1x32xf32>, vector<1x32xf32>, vector<1x32xf32>, vector<1x32xf32>, vector<1x32xf32> -> vector<8x32xf32>
    %c72 = arith.constant 72 : index
    %c0_90 = arith.constant 0 : index
    %334 = vector.load %arg2[%c72, %c0_90] : memref<128x128xf32, #tpu.memory_space<vmem>>, vector<32x128xf32>
    %c104 = arith.constant 104 : index
    %c0_91 = arith.constant 0 : index
    %335 = vector.load %arg2[%c104, %c0_91] : memref<128x128xf32, #tpu.memory_space<vmem>>, vector<1x128xf32>
    %cst_92 = arith.constant dense<0.000000e+00> : vector<8x128xf32>
    %336 = tpu.matmul %333, %334, %cst_92 {dimension_numbers = #tpu.dot_dimension_numbers<[1], [0], [0], [1], [0, 0, 1, 1], [], []>} : vector<8x32xf32>, vector<32x128xf32>, vector<8x128xf32> -> vector<8x128xf32>
    %337 = vector.broadcast %335 : vector<1x128xf32> to vector<8x128xf32>
    %338 = arith.addf %336, %337 : vector<8x128xf32>
    %339 = vector.extract_strided_slice %338 {offsets = [0, 0], sizes = [8, 5], strides = [1, 1]} : vector<8x128xf32> to vector<8x5xf32>
    %c112 = arith.constant 112 : index
    %c0_93 = arith.constant 0 : index
    %340 = vector.load %arg2[%c112, %c0_93] : memref<128x128xf32, #tpu.memory_space<vmem>>, vector<5x128xf32>
    %341 = vector.extract_strided_slice %340 {offsets = [0, 0], sizes = [5, 5], strides = [1, 1]} : vector<5x128xf32> to vector<5x5xf32>
    %c120 = arith.constant 120 : index
    %c0_94 = arith.constant 0 : index
    %342 = vector.load %arg2[%c120, %c0_94] : memref<128x128xf32, #tpu.memory_space<vmem>>, vector<5x128xf32>
    %343 = vector.extract_strided_slice %342 {offsets = [0, 0], sizes = [5, 5], strides = [1, 1]} : vector<5x128xf32> to vector<5x5xf32>
    %344 = tpu.iota {dimensions = array<i32: 0>} : vector<5x5xi32>
    %345 = tpu.iota {dimensions = array<i32: 1>} : vector<5x5xi32>
    %346 = arith.cmpi eq, %344, %345 : vector<5x5xi32>
    %347 = tpu.iota {dimensions = array<i32: 0>} : vector<5x1xi32>
    %348 = tpu.iota {dimensions = array<i32: 1>} : vector<1x5xi32>
    %349 = vector.extract_strided_slice %339 {offsets = [1, 0], sizes = [1, 5], strides = [1, 1]} : vector<8x5xf32> to vector<1x5xf32>
    %350 = vector.shape_cast %349 : vector<1x5xf32> to vector<1x5xf32>
    %351 = vector.broadcast %350 : vector<1x5xf32> to vector<5x5xf32>
    %cst_95 = arith.constant 0xFF800000 : f32
    %352 = vector.broadcast %cst_95 : f32 to vector<5x5xf32>
    %353 = arith.select %346, %351, %352 : vector<5x5xi1>, vector<5x5xf32>
    %cst_96 = arith.constant dense<0xFF800000> : vector<5xf32>
    %354 = vector.multi_reduction <maximumf>, %353, %cst_96 [1] : vector<5x5xf32> to vector<5xf32>
    %355 = vector.shape_cast %354 : vector<5xf32> to vector<5x1xf32>
    %356 = vector.extract_strided_slice %339 {offsets = [3, 0], sizes = [1, 5], strides = [1, 1]} : vector<8x5xf32> to vector<1x5xf32>
    %357 = vector.shape_cast %356 : vector<1x5xf32> to vector<1x5xf32>
    %358 = vector.broadcast %357 : vector<1x5xf32> to vector<5x5xf32>
    %cst_97 = arith.constant 0xFF800000 : f32
    %359 = vector.broadcast %cst_97 : f32 to vector<5x5xf32>
    %360 = arith.select %346, %358, %359 : vector<5x5xi1>, vector<5x5xf32>
    %cst_98 = arith.constant dense<0xFF800000> : vector<5xf32>
    %361 = vector.multi_reduction <maximumf>, %360, %cst_98 [1] : vector<5x5xf32> to vector<5xf32>
    %362 = vector.shape_cast %361 : vector<5xf32> to vector<5x1xf32>
    %363 = vector.extract_strided_slice %339 {offsets = [5, 0], sizes = [1, 5], strides = [1, 1]} : vector<8x5xf32> to vector<1x5xf32>
    %364 = vector.shape_cast %363 : vector<1x5xf32> to vector<1x5xf32>
    %365 = vector.broadcast %364 : vector<1x5xf32> to vector<5x5xf32>
    %cst_99 = arith.constant 0xFF800000 : f32
    %366 = vector.broadcast %cst_99 : f32 to vector<5x5xf32>
    %367 = arith.select %346, %365, %366 : vector<5x5xi1>, vector<5x5xf32>
    %cst_100 = arith.constant dense<0xFF800000> : vector<5xf32>
    %368 = vector.multi_reduction <maximumf>, %367, %cst_100 [1] : vector<5x5xf32> to vector<5xf32>
    %369 = vector.shape_cast %368 : vector<5xf32> to vector<5x1xf32>
    %370 = vector.extract_strided_slice %339 {offsets = [7, 0], sizes = [1, 5], strides = [1, 1]} : vector<8x5xf32> to vector<1x5xf32>
    %371 = vector.shape_cast %370 : vector<1x5xf32> to vector<1x5xf32>
    %372 = vector.broadcast %371 : vector<1x5xf32> to vector<5x5xf32>
    %cst_101 = arith.constant 0xFF800000 : f32
    %373 = vector.broadcast %cst_101 : f32 to vector<5x5xf32>
    %374 = arith.select %346, %372, %373 : vector<5x5xi1>, vector<5x5xf32>
    %cst_102 = arith.constant dense<0xFF800000> : vector<5xf32>
    %375 = vector.multi_reduction <maximumf>, %374, %cst_102 [1] : vector<5x5xf32> to vector<5xf32>
    %376 = vector.shape_cast %375 : vector<5xf32> to vector<5x1xf32>
    %377 = vector.extract_strided_slice %339 {offsets = [0, 0], sizes = [1, 5], strides = [1, 1]} : vector<8x5xf32> to vector<1x5xf32>
    %378 = vector.broadcast %377 : vector<1x5xf32> to vector<5x5xf32>
    %379 = arith.addf %378, %343 : vector<5x5xf32>
    %cst_103 = arith.constant dense<0xFF800000> : vector<5xf32>
    %380 = vector.multi_reduction <maximumf>, %379, %cst_103 [1] : vector<5x5xf32> to vector<5xf32>
    %381 = vector.shape_cast %380 : vector<5xf32> to vector<5x1xf32>
    %382 = vector.broadcast %381 : vector<5x1xf32> to vector<5x5xf32>
    %383 = arith.cmpf oeq, %379, %382 : vector<5x5xf32>
    %c5_i32 = arith.constant 5 : i32
    %384 = vector.broadcast %c5_i32 : i32 to vector<5x5xi32>
    %385 = arith.select %383, %345, %384 : vector<5x5xi1>, vector<5x5xi32>
    %cst_104 = arith.constant dense<2147483647> : vector<5xi32>
    %386 = vector.multi_reduction <minsi>, %385, %cst_104 [1] : vector<5x5xi32> to vector<5xi32>
    %387 = vector.shape_cast %386 : vector<5xi32> to vector<5x1xi32>
    %388 = arith.addf %381, %355 : vector<5x1xf32>
    %389 = vector.broadcast %388 : vector<5x1xf32> to vector<5x5xf32>
    %390 = arith.addf %389, %341 : vector<5x5xf32>
    %cst_105 = arith.constant dense<0xFF800000> : vector<5xf32>
    %391 = vector.multi_reduction <maximumf>, %390, %cst_105 [0] : vector<5x5xf32> to vector<5xf32>
    %392 = vector.shape_cast %391 : vector<5xf32> to vector<1x5xf32>
    %393 = vector.broadcast %392 : vector<1x5xf32> to vector<5x5xf32>
    %394 = arith.cmpf oeq, %390, %393 : vector<5x5xf32>
    %c5_i32_106 = arith.constant 5 : i32
    %395 = vector.broadcast %c5_i32_106 : i32 to vector<5x5xi32>
    %396 = arith.select %394, %344, %395 : vector<5x5xi1>, vector<5x5xi32>
    %cst_107 = arith.constant dense<2147483647> : vector<5xi32>
    %397 = vector.multi_reduction <minsi>, %396, %cst_107 [0] : vector<5x5xi32> to vector<5xi32>
    %398 = vector.shape_cast %397 : vector<5xi32> to vector<1x5xi32>
    %399 = vector.extract_strided_slice %339 {offsets = [2, 0], sizes = [1, 5], strides = [1, 1]} : vector<8x5xf32> to vector<1x5xf32>
    %400 = arith.addf %392, %399 : vector<1x5xf32>
    %401 = vector.broadcast %400 : vector<1x5xf32> to vector<5x5xf32>
    %402 = arith.addf %401, %343 : vector<5x5xf32>
    %cst_108 = arith.constant dense<0xFF800000> : vector<5xf32>
    %403 = vector.multi_reduction <maximumf>, %402, %cst_108 [1] : vector<5x5xf32> to vector<5xf32>
    %404 = vector.shape_cast %403 : vector<5xf32> to vector<5x1xf32>
    %405 = vector.broadcast %404 : vector<5x1xf32> to vector<5x5xf32>
    %406 = arith.cmpf oeq, %402, %405 : vector<5x5xf32>
    %c5_i32_109 = arith.constant 5 : i32
    %407 = vector.broadcast %c5_i32_109 : i32 to vector<5x5xi32>
    %408 = arith.select %406, %345, %407 : vector<5x5xi1>, vector<5x5xi32>
    %cst_110 = arith.constant dense<2147483647> : vector<5xi32>
    %409 = vector.multi_reduction <minsi>, %408, %cst_110 [1] : vector<5x5xi32> to vector<5xi32>
    %410 = vector.shape_cast %409 : vector<5xi32> to vector<5x1xi32>
    %411 = arith.addf %404, %362 : vector<5x1xf32>
    %412 = vector.broadcast %411 : vector<5x1xf32> to vector<5x5xf32>
    %413 = arith.addf %412, %341 : vector<5x5xf32>
    %cst_111 = arith.constant dense<0xFF800000> : vector<5xf32>
    %414 = vector.multi_reduction <maximumf>, %413, %cst_111 [0] : vector<5x5xf32> to vector<5xf32>
    %415 = vector.shape_cast %414 : vector<5xf32> to vector<1x5xf32>
    %416 = vector.broadcast %415 : vector<1x5xf32> to vector<5x5xf32>
    %417 = arith.cmpf oeq, %413, %416 : vector<5x5xf32>
    %c5_i32_112 = arith.constant 5 : i32
    %418 = vector.broadcast %c5_i32_112 : i32 to vector<5x5xi32>
    %419 = arith.select %417, %344, %418 : vector<5x5xi1>, vector<5x5xi32>
    %cst_113 = arith.constant dense<2147483647> : vector<5xi32>
    %420 = vector.multi_reduction <minsi>, %419, %cst_113 [0] : vector<5x5xi32> to vector<5xi32>
    %421 = vector.shape_cast %420 : vector<5xi32> to vector<1x5xi32>
    %422 = vector.extract_strided_slice %339 {offsets = [4, 0], sizes = [1, 5], strides = [1, 1]} : vector<8x5xf32> to vector<1x5xf32>
    %423 = arith.addf %415, %422 : vector<1x5xf32>
    %424 = vector.broadcast %423 : vector<1x5xf32> to vector<5x5xf32>
    %425 = arith.addf %424, %343 : vector<5x5xf32>
    %cst_114 = arith.constant dense<0xFF800000> : vector<5xf32>
    %426 = vector.multi_reduction <maximumf>, %425, %cst_114 [1] : vector<5x5xf32> to vector<5xf32>
    %427 = vector.shape_cast %426 : vector<5xf32> to vector<5x1xf32>
    %428 = vector.broadcast %427 : vector<5x1xf32> to vector<5x5xf32>
    %429 = arith.cmpf oeq, %425, %428 : vector<5x5xf32>
    %c5_i32_115 = arith.constant 5 : i32
    %430 = vector.broadcast %c5_i32_115 : i32 to vector<5x5xi32>
    %431 = arith.select %429, %345, %430 : vector<5x5xi1>, vector<5x5xi32>
    %cst_116 = arith.constant dense<2147483647> : vector<5xi32>
    %432 = vector.multi_reduction <minsi>, %431, %cst_116 [1] : vector<5x5xi32> to vector<5xi32>
    %433 = vector.shape_cast %432 : vector<5xi32> to vector<5x1xi32>
    %434 = arith.addf %427, %369 : vector<5x1xf32>
    %435 = vector.broadcast %434 : vector<5x1xf32> to vector<5x5xf32>
    %436 = arith.addf %435, %341 : vector<5x5xf32>
    %cst_117 = arith.constant dense<0xFF800000> : vector<5xf32>
    %437 = vector.multi_reduction <maximumf>, %436, %cst_117 [0] : vector<5x5xf32> to vector<5xf32>
    %438 = vector.shape_cast %437 : vector<5xf32> to vector<1x5xf32>
    %439 = vector.broadcast %438 : vector<1x5xf32> to vector<5x5xf32>
    %440 = arith.cmpf oeq, %436, %439 : vector<5x5xf32>
    %c5_i32_118 = arith.constant 5 : i32
    %441 = vector.broadcast %c5_i32_118 : i32 to vector<5x5xi32>
    %442 = arith.select %440, %344, %441 : vector<5x5xi1>, vector<5x5xi32>
    %cst_119 = arith.constant dense<2147483647> : vector<5xi32>
    %443 = vector.multi_reduction <minsi>, %442, %cst_119 [0] : vector<5x5xi32> to vector<5xi32>
    %444 = vector.shape_cast %443 : vector<5xi32> to vector<1x5xi32>
    %445 = vector.extract_strided_slice %339 {offsets = [6, 0], sizes = [1, 5], strides = [1, 1]} : vector<8x5xf32> to vector<1x5xf32>
    %446 = arith.addf %438, %445 : vector<1x5xf32>
    %447 = vector.broadcast %446 : vector<1x5xf32> to vector<5x5xf32>
    %448 = arith.addf %447, %343 : vector<5x5xf32>
    %cst_120 = arith.constant dense<0xFF800000> : vector<5xf32>
    %449 = vector.multi_reduction <maximumf>, %448, %cst_120 [1] : vector<5x5xf32> to vector<5xf32>
    %450 = vector.shape_cast %449 : vector<5xf32> to vector<5x1xf32>
    %451 = vector.broadcast %450 : vector<5x1xf32> to vector<5x5xf32>
    %452 = arith.cmpf oeq, %448, %451 : vector<5x5xf32>
    %c5_i32_121 = arith.constant 5 : i32
    %453 = vector.broadcast %c5_i32_121 : i32 to vector<5x5xi32>
    %454 = arith.select %452, %345, %453 : vector<5x5xi1>, vector<5x5xi32>
    %cst_122 = arith.constant dense<2147483647> : vector<5xi32>
    %455 = vector.multi_reduction <minsi>, %454, %cst_122 [1] : vector<5x5xi32> to vector<5xi32>
    %456 = vector.shape_cast %455 : vector<5xi32> to vector<5x1xi32>
    %457 = arith.addf %450, %376 : vector<5x1xf32>
    %cst_123 = arith.constant dense<0xFF800000> : vector<1xf32>
    %458 = vector.multi_reduction <maximumf>, %457, %cst_123 [0] : vector<5x1xf32> to vector<1xf32>
    %459 = vector.shape_cast %458 : vector<1xf32> to vector<1x1xf32>
    %460 = vector.broadcast %459 : vector<1x1xf32> to vector<5x1xf32>
    %461 = arith.cmpf oeq, %457, %460 : vector<5x1xf32>
    %c5_i32_124 = arith.constant 5 : i32
    %462 = vector.broadcast %c5_i32_124 : i32 to vector<5x1xi32>
    %463 = arith.select %461, %347, %462 : vector<5x1xi1>, vector<5x1xi32>
    %cst_125 = arith.constant dense<2147483647> : vector<1xi32>
    %464 = vector.multi_reduction <minsi>, %463, %cst_125 [0] : vector<5x1xi32> to vector<1xi32>
    %465 = vector.shape_cast %464 : vector<1xi32> to vector<1x1xi32>
    %466 = tpu.iota {dimensions = array<i32: 1>} : vector<1x128xi32>
    %c15_i32 = arith.constant 15 : i32
    %467 = vector.broadcast %c15_i32 : i32 to vector<1x128xi32>
    %468 = arith.cmpi eq, %466, %467 : vector<1x128xi32>
    %469 = arith.sitofp %465 : vector<1x1xi32> to vector<1x1xf32>
    %cst_126 = arith.constant 0.000000e+00 : f32
    %470 = vector.shape_cast %469 : vector<1x1xf32> to vector<1x1xf32>
    %471 = vector.broadcast %470 : vector<1x1xf32> to vector<1x128xf32>
    %472 = vector.broadcast %cst_126 : f32 to vector<1x128xf32>
    %473 = arith.select %468, %471, %472 : vector<1x128xi1>, vector<1x128xf32>
    %474 = vector.broadcast %465 : vector<1x1xi32> to vector<5x1xi32>
    %475 = arith.cmpi eq, %347, %474 : vector<5x1xi32>
    %c0_i32_127 = arith.constant 0 : i32
    %476 = vector.broadcast %c0_i32_127 : i32 to vector<5x1xi32>
    %477 = arith.select %475, %456, %476 : vector<5x1xi1>, vector<5x1xi32>
    %cst_128 = arith.constant dense<0> : vector<1xi32>
    %478 = vector.multi_reduction <add>, %477, %cst_128 [0] : vector<5x1xi32> to vector<1xi32>
    %479 = vector.shape_cast %478 : vector<1xi32> to vector<1x1xi32>
    %c14_i32 = arith.constant 14 : i32
    %480 = vector.broadcast %c14_i32 : i32 to vector<1x128xi32>
    %481 = arith.cmpi eq, %466, %480 : vector<1x128xi32>
    %482 = arith.sitofp %479 : vector<1x1xi32> to vector<1x1xf32>
    %483 = vector.shape_cast %482 : vector<1x1xf32> to vector<1x1xf32>
    %484 = vector.broadcast %483 : vector<1x1xf32> to vector<1x128xf32>
    %485 = arith.select %481, %484, %473 : vector<1x128xi1>, vector<1x128xf32>
    %486 = vector.broadcast %479 : vector<1x1xi32> to vector<1x5xi32>
    %487 = arith.cmpi eq, %348, %486 : vector<1x5xi32>
    %c0_i32_129 = arith.constant 0 : i32
    %488 = vector.broadcast %c0_i32_129 : i32 to vector<1x5xi32>
    %489 = arith.select %487, %444, %488 : vector<1x5xi1>, vector<1x5xi32>
    %cst_130 = arith.constant dense<0> : vector<1xi32>
    %490 = vector.multi_reduction <add>, %489, %cst_130 [1] : vector<1x5xi32> to vector<1xi32>
    %491 = vector.shape_cast %490 : vector<1xi32> to vector<1x1xi32>
    %c13_i32 = arith.constant 13 : i32
    %492 = vector.broadcast %c13_i32 : i32 to vector<1x128xi32>
    %493 = arith.cmpi eq, %466, %492 : vector<1x128xi32>
    %494 = arith.sitofp %491 : vector<1x1xi32> to vector<1x1xf32>
    %495 = vector.shape_cast %494 : vector<1x1xf32> to vector<1x1xf32>
    %496 = vector.broadcast %495 : vector<1x1xf32> to vector<1x128xf32>
    %497 = arith.select %493, %496, %485 : vector<1x128xi1>, vector<1x128xf32>
    %498 = vector.broadcast %491 : vector<1x1xi32> to vector<5x1xi32>
    %499 = arith.cmpi eq, %347, %498 : vector<5x1xi32>
    %c0_i32_131 = arith.constant 0 : i32
    %500 = vector.broadcast %c0_i32_131 : i32 to vector<5x1xi32>
    %501 = arith.select %499, %433, %500 : vector<5x1xi1>, vector<5x1xi32>
    %cst_132 = arith.constant dense<0> : vector<1xi32>
    %502 = vector.multi_reduction <add>, %501, %cst_132 [0] : vector<5x1xi32> to vector<1xi32>
    %503 = vector.shape_cast %502 : vector<1xi32> to vector<1x1xi32>
    %c12_i32 = arith.constant 12 : i32
    %504 = vector.broadcast %c12_i32 : i32 to vector<1x128xi32>
    %505 = arith.cmpi eq, %466, %504 : vector<1x128xi32>
    %506 = arith.sitofp %503 : vector<1x1xi32> to vector<1x1xf32>
    %507 = vector.shape_cast %506 : vector<1x1xf32> to vector<1x1xf32>
    %508 = vector.broadcast %507 : vector<1x1xf32> to vector<1x128xf32>
    %509 = arith.select %505, %508, %497 : vector<1x128xi1>, vector<1x128xf32>
    %510 = vector.broadcast %503 : vector<1x1xi32> to vector<1x5xi32>
    %511 = arith.cmpi eq, %348, %510 : vector<1x5xi32>
    %c0_i32_133 = arith.constant 0 : i32
    %512 = vector.broadcast %c0_i32_133 : i32 to vector<1x5xi32>
    %513 = arith.select %511, %421, %512 : vector<1x5xi1>, vector<1x5xi32>
    %cst_134 = arith.constant dense<0> : vector<1xi32>
    %514 = vector.multi_reduction <add>, %513, %cst_134 [1] : vector<1x5xi32> to vector<1xi32>
    %515 = vector.shape_cast %514 : vector<1xi32> to vector<1x1xi32>
    %c11_i32 = arith.constant 11 : i32
    %516 = vector.broadcast %c11_i32 : i32 to vector<1x128xi32>
    %517 = arith.cmpi eq, %466, %516 : vector<1x128xi32>
    %518 = arith.sitofp %515 : vector<1x1xi32> to vector<1x1xf32>
    %519 = vector.shape_cast %518 : vector<1x1xf32> to vector<1x1xf32>
    %520 = vector.broadcast %519 : vector<1x1xf32> to vector<1x128xf32>
    %521 = arith.select %517, %520, %509 : vector<1x128xi1>, vector<1x128xf32>
    %522 = vector.broadcast %515 : vector<1x1xi32> to vector<5x1xi32>
    %523 = arith.cmpi eq, %347, %522 : vector<5x1xi32>
    %c0_i32_135 = arith.constant 0 : i32
    %524 = vector.broadcast %c0_i32_135 : i32 to vector<5x1xi32>
    %525 = arith.select %523, %410, %524 : vector<5x1xi1>, vector<5x1xi32>
    %cst_136 = arith.constant dense<0> : vector<1xi32>
    %526 = vector.multi_reduction <add>, %525, %cst_136 [0] : vector<5x1xi32> to vector<1xi32>
    %527 = vector.shape_cast %526 : vector<1xi32> to vector<1x1xi32>
    %c10_i32 = arith.constant 10 : i32
    %528 = vector.broadcast %c10_i32 : i32 to vector<1x128xi32>
    %529 = arith.cmpi eq, %466, %528 : vector<1x128xi32>
    %530 = arith.sitofp %527 : vector<1x1xi32> to vector<1x1xf32>
    %531 = vector.shape_cast %530 : vector<1x1xf32> to vector<1x1xf32>
    %532 = vector.broadcast %531 : vector<1x1xf32> to vector<1x128xf32>
    %533 = arith.select %529, %532, %521 : vector<1x128xi1>, vector<1x128xf32>
    %534 = vector.broadcast %527 : vector<1x1xi32> to vector<1x5xi32>
    %535 = arith.cmpi eq, %348, %534 : vector<1x5xi32>
    %c0_i32_137 = arith.constant 0 : i32
    %536 = vector.broadcast %c0_i32_137 : i32 to vector<1x5xi32>
    %537 = arith.select %535, %398, %536 : vector<1x5xi1>, vector<1x5xi32>
    %cst_138 = arith.constant dense<0> : vector<1xi32>
    %538 = vector.multi_reduction <add>, %537, %cst_138 [1] : vector<1x5xi32> to vector<1xi32>
    %539 = vector.shape_cast %538 : vector<1xi32> to vector<1x1xi32>
    %c9_i32 = arith.constant 9 : i32
    %540 = vector.broadcast %c9_i32 : i32 to vector<1x128xi32>
    %541 = arith.cmpi eq, %466, %540 : vector<1x128xi32>
    %542 = arith.sitofp %539 : vector<1x1xi32> to vector<1x1xf32>
    %543 = vector.shape_cast %542 : vector<1x1xf32> to vector<1x1xf32>
    %544 = vector.broadcast %543 : vector<1x1xf32> to vector<1x128xf32>
    %545 = arith.select %541, %544, %533 : vector<1x128xi1>, vector<1x128xf32>
    %546 = vector.broadcast %539 : vector<1x1xi32> to vector<5x1xi32>
    %547 = arith.cmpi eq, %347, %546 : vector<5x1xi32>
    %c0_i32_139 = arith.constant 0 : i32
    %548 = vector.broadcast %c0_i32_139 : i32 to vector<5x1xi32>
    %549 = arith.select %547, %387, %548 : vector<5x1xi1>, vector<5x1xi32>
    %cst_140 = arith.constant dense<0> : vector<1xi32>
    %550 = vector.multi_reduction <add>, %549, %cst_140 [0] : vector<5x1xi32> to vector<1xi32>
    %551 = vector.shape_cast %550 : vector<1xi32> to vector<1x1xi32>
    %c8_i32 = arith.constant 8 : i32
    %552 = vector.broadcast %c8_i32 : i32 to vector<1x128xi32>
    %553 = arith.cmpi eq, %466, %552 : vector<1x128xi32>
    %554 = arith.sitofp %551 : vector<1x1xi32> to vector<1x1xf32>
    %555 = vector.shape_cast %554 : vector<1x1xf32> to vector<1x1xf32>
    %556 = vector.broadcast %555 : vector<1x1xf32> to vector<1x128xf32>
    %557 = arith.select %553, %556, %545 : vector<1x128xi1>, vector<1x128xf32>
    %558 = vector.broadcast %557 : vector<1x128xf32> to vector<8x128xf32>
    %559 = arith.addf %338, %558 : vector<8x128xf32>
    %c0_141 = arith.constant 0 : index
    %c0_142 = arith.constant 0 : index
    %560 = vector.load %arg3[%c0_141, %c0_142] : memref<8x128xf32, #tpu.memory_space<vmem>>, vector<8x128xf32>
    tpu.vector_store %arg3[%c0_141, %c0_142], %559 {strides = array<i32>} : memref<8x128xf32, #tpu.memory_space<vmem>>, vector<8x128xf32>,
    return
  }
  func.func @transform_0(%arg0: i32) -> (i32, i32) {
    %c0_i32 = arith.constant 0 : i32
    %c0_i32_0 = arith.constant 0 : i32
    %c0_i32_1 = arith.constant 0 : i32
    return %c0_i32, %c0_i32_0 : i32, i32
  }
  func.func @transform_1(%arg0: i32) -> (i32, i32) {
    %c0_i32 = arith.constant 0 : i32
    %c0_i32_0 = arith.constant 0 : i32
    %c0_i32_1 = arith.constant 0 : i32
    return %c0_i32, %c0_i32_0 : i32, i32
  }
  func.func @transform_2(%arg0: i32) -> (i32, i32) {
    %c0_i32 = arith.constant 0 : i32
    %c0_i32_0 = arith.constant 0 : i32
    %c0_i32_1 = arith.constant 0 : i32
    return %c0_i32, %c0_i32_0 : i32, i32
  }
}

</mosaic_0001>

<bundles_post_ra>
// kernel: bilstm_crf_call.1
= control target key start
LH: loop header
LB: loop body
LE: loop exit
PB: predicated region body
PF: predicated region fallthrough
CT: control target
= control target key end

     0   :  { %7 = vsyncpa [#allocation3], 0  ;;  %s1770_s9 = smov [#allocation2]   ;;  %s2133_s0 = inlined_call_operand.vmem [shape: s32[8,1], index: 0, kind: input, shape index: {}]   ;;  %s2134_s1 = inlined_call_operand.hbm [shape: f32[128,128], index: 1, kind: input, shape index: {}]   ;;  %s2135_s2 = inlined_call_operand.vmem [shape: f32[8,128], index: 2, kind: output, shape index: {}]  }
   0x1   :  { %s15_s10 = sshll.u32 %s1770_s9, 4  ;;  %s1746_s13 = scalar_lea.hbm %s2134_s1, 2048  ;;  %s16_s10 = int_to_ptr.vmem [resolvable:$true] %s15_s10 }
   0x2   :  { %p1747_p0 = scmp.ne.s32.totalorder %s2134_s1, %s1746_s13  ;;  %p1750_p1 = scmp.lt.u32.totalorder %s1746_s13, %s2134_s1 }
   0x4   :  { %p1752_p2 = pnand %p1750_p1, %p1747_p0 }
   0x6   :  { %1755 = shalt.err (!%p1752_p2)
}
   0x7   :  { %s1756_s18 = scalar_lea.vmem %s16_s10, 2048  ;;  %p1761_p4 = scmp.lt.s32.totalorder %s16_s10, %s16_s10 }
   0x8   :  { %p1757_p3 = scmp.ne.s32.totalorder %s16_s10, %s1756_s18  ;;  %p1762_p5 = scmp.lt.s32.totalorder %s1756_s18, %s1756_s18 }
   0xa   :  { %p1763_p6 = por %p1762_p5, %p1761_p4 }
   0xc   :  { %p1764_p7 = pnand %p1763_p6, %p1757_p3 }
   0xe   :  { %1767 = shalt.err (!%p1764_p7)
}
   0xf   :  { %s1771_s19 = smov 128   ;;  %s1772_s20 = smov 8  }
  0x10   :  { %21 = dma.hbm_to_vmem [thread:$0]  %s2134_s1, 2048, %s16_s10, [#allocation3], %s1771_s19, %s1771_s19, %s1772_s20  }
  0x11   :  { %1768 = dma.done.wait [#allocation3], 2048  }
  0x12   :  { %1769 = vsyncadd [#allocation3], 4294965248  ;;  %v1773_v0 = vmov 0   ;;  %v1774_v1 = vmov 0.0|0.0   ;;  %v27_v2 = vld [vmem:[%s2133_s0] sm:$0xff]  ;;  %v35_v4 = vld [vmem:[#allocation2 + $0x8] sm:$0xff]  ;;  %v25_v16 = vlaneseq }
  0x13   :  { %1697 = vset.pattern.permute.xlu0 %v1773_v0  ;;  %1631 = vmatprep.subr.bf16.mxu0 %v1774_v1  ;;  %v34_v3 = vld [vmem:[#allocation2] sm:$0xff]  ;;  %v146_v6 = vld [vmem:[#allocation2 + $0x18] sm:$0xff]  ;;  %vm1775_vm0 = vmmov 0   ;;  %v1776_v9 = vmov 0.0   ;;  %v148_v10 = vld [vmem:[#allocation2 + $0x28] sm:$0xff]  ;;  %vm46_vm1 = vcmask 1043456  }
  0x14   :  { %1634 = vmatprep.subr.bf16.mxu1 %v1774_v1  ;;  %29 = vperm.xlu0 %1697, %v27_v2   ;;  %v1632_v5 = vpack.c.bf16 %v35_v4, %v34_v3  ;;  %v147_v7 = vld [vmem:[#allocation2 + $0x20] sm:$0xff]  ;;  %v149_v11 = vld [vmem:[#allocation2 + $0x30] sm:$0xff]  ;;  %s1777_s0 = smov 32   ;;  %vm151_vm2 = vcmask 261120   ;;  %v1835_v17 = vand.u32 127, %v25_v16  ;;  %vm42_vm3 = vcmask 162816  }
  0x15   :  { %v1811_v8 = vpack.c.bf16 %v147_v7, %v146_v6  ;;  %1529 = vmatprep.mubr.msk.f32.mxu0 %vm1775_vm0, %v1776_v9  ;;  %1540 = vmatprep.mubr.msk.f32.mxu1 %vm1775_vm0, %v1776_v9  ;;  %v150_v12 = vld [vmem:[#allocation2 + $0x40] sm:$0x3]  ;;  %v36_v13 = vld [vmem:[#allocation2 + $0x10] sm:$0xf]  ;;  %v1819_v14 = vpack.c.bf16 %v149_v11, %v148_v10  ;;  %v1461_v22 = vld [vmem:[#allocation2 + $0x38] ss:$0 sm:$0xff] }
  0x16   :  { %1633 = vmatpush3.bf16.msra.mxu0 %v1632_v5  ;;  %v231_v15 = vrot.slane %v150_v12, 1  ;;  %v124_v23 = vand.u32 31, %v1835_v17  ;;  %s1778_s1 = smov 64   ;;  %vm986_vm6 = vcmp.lt.s32.totalorder %v1835_v17, 16  ;;  %vm1028_vm7 = vcmask 1040384  }
  0x17   :  { %1636 = vmatpush3.bf16.msra.mxu1 %v1811_v8  ;;  %1527 = vmatprep.subr.mxu0 %v1776_v9  ;;  %vm1030_vm8 = vcmask 1041408   ;;  %vm1032_vm9 = vcmask 1042432   ;;  %vm1035_vm10 = vcmask 1044480   ;;  %vm1037_vm11 = vcmask 1045504  }
  0x18   :  { %1637 = vmatprep.subr.bf16.mxu1 %v1774_v1  ;;  %232 = vrot.lane.b32.xlu1 %v231_v15, %s1777_s0  ;;  %vm132_vm5 = vcmp.lt.s32.totalorder %v124_v23, 16  ;;  %vm1039_vm12 = vcmask 1046528   ;;  %vm1133_vm14 = vcmask 36864  }
  0x1a   :  { %1528 = vmatpush3.msk.msra.mxu0 %vm46_vm1, %v36_v13 }
  0x1b   :  { %1639 = vmatpush3.bf16.msra.mxu1 %v1819_v14  ;;  %1640 = vmatprep.subr.bf16.mxu0 %v1774_v1 }
  0x1c   :  { %1646 = vmatprep.subr.bf16.mxu1 %v1774_v1 }
  0x1e   :  { %1541 = vmatmul.mubr.msk.f32.vlgmr.msra.gmra.mrb[0].mxu1 %vm151_vm2, %v150_v12 }
  0x1f   :  { %1648 = vmatpush3.bf16.msra.mxu1 %v1811_v8  ;;  %1562 = vmatprep.mubr.msk.f32.mxu1 %vm1775_vm0, %v1776_v9 }
  0x20   :  { %1649 = vmatprep.subr.bf16.mxu1 %v1774_v1 }
  0x23   :  { %1651 = vmatpush3.bf16.msra.mxu1 %v1819_v14 }
  0x24   :  { %1658 = vmatprep.subr.bf16.mxu1 %v1774_v1 }
  0x8a   :  { %v233_v43 = vpop.permute.xlu1 %232 }
  0x93   :  { %v30_v18 = vpop.permute.xlu0 %29 }
  0x94   :  { %vm31_vm4 = vcmp.eq.s32.totalorder %v1835_v17, %v30_v18 }
  0x95   :  { %v1460_v19 = vsel %vm31_vm4, 1.0, %v1776_v9 }
  0x96   :  { %1530 = vmatmul.mubr.msk.f32.vlgmr.msra.gmra.mrb[0].mxu0 %vm42_vm3, %v1460_v19 }
  0x97   :  { %1642 = vmatpush3.bf16.msra.mxu0 %v1811_v8  ;;  %1551 = vmatprep.mubr.msk.f32.mxu0 %vm1775_vm0, %v1776_v9 }
  0x98   :  { %1643 = vmatprep.subr.bf16.mxu0 %v1774_v1 }
  0x9b   :  { %1645 = vmatpush3.bf16.msra.mxu0 %v1819_v14 }
  0x9c   :  { %1652 = vmatprep.subr.bf16.mxu0 %v1774_v1 }
  0xf1   :  { %v221_v20 = vpop.f32.mrb[0].mxu1 }
  0xf2   :  { %v1542_v21 = vpop.f32.mrb[1].mxu1 }
 0x169   :  { %v116_v24 = vpop.f32.mrb[0].mxu0 }
 0x16a   :  { %v117_v25 = vadd.f32 %v1461_v22, %v116_v24  ;;  %v1531_v26 = vpop.f32.mrb[1].mxu0 }
 0x16c   :  { %v134_v27 = vrot.slane %v117_v25, 7  ;;  %v137_v28 = vrot.slane %v117_v25, 5  ;;  %v140_v29 = vrot.slane %v117_v25, 3  ;;  %v143_v30 = vrot.slane %v117_v25, 1 }
 0x16e   :  { %v1846_v31 = vsel %vm132_vm5, %v117_v25, %v134_v27  ;;  %v1848_v32 = vsel %vm132_vm5, %v117_v25, %v137_v28  ;;  %v1850_v33 = vsel %vm132_vm5, %v117_v25, %v140_v29  ;;  %v1852_v34 = vsel %vm132_vm5, %v117_v25, %v143_v30 }
 0x16f   :  { %v225_v35 = vadd.f32 %v221_v20, %v1846_v31 }
 0x171   :  { %1698 = vtanh.f32 %v225_v35  ;;  %v226_v37 = vmul.f32 0.5, %v225_v35 }
 0x173   :  { %1700 = vtanh.f32 %v226_v37 }
 0x17b   :  { %v1699_v36 = vpop.eup %1698 }
 0x17c   :  { %237 = vrot.lane.b32.xlu0 %v1699_v36, %s1778_s1 }
 0x17d   :  { %v1701_v38 = vpop.eup %1700 }
 0x17e   :  { %v228_v39 = vadd.f32 1.0, %v1701_v38 }
 0x180   :  { %v229_v40 = vmul.f32 0.5, %v228_v39 }
 0x182   :  { %v235_v44 = vmul.f32 %v233_v43, %v229_v40 }
 0x1ee   :  { %v238_v41 = vpop.permute.xlu0 %237 }
 0x1ef   :  { %v240_v42 = vmul.f32 %v238_v41, %v229_v40 }
 0x1f1   :  { %242 = vrot.lane.b32.xlu1 %v240_v42, %s1777_s0 }
 0x263   :  { %v243_v45 = vpop.permute.xlu1 %242 }
 0x264   :  { %v245_v46 = vadd.f32 %v243_v45, %v235_v44 }
 0x266   :  { %1702 = vtanh.f32 %v245_v46  ;;  %v337_v62 = vrot.slane %v245_v46, 7 }
 0x270   :  { %v1703_v47 = vpop.eup %1702 }
 0x271   :  { %248 = vrot.lane.b32.xlu0 %v1703_v47, %s1778_s1 }
 0x2e3   :  { %v249_v48 = vpop.permute.xlu0 %248 }
 0x2e4   :  { %v251_v49 = vmul.f32 %v249_v48, %v229_v40 }
 0x2e6   :  { %253 = vrot.lane.b32.xlu1 %v251_v49, %s1777_s0 }
 0x358   :  { %v1859_v50 = vpop.permute.xlu1 %253 }
 0x359   :  { %1552 = vmatmul.mubr.msk.f32.vlgmr.msra.gmra.mrb[2].mxu0 %vm151_vm2, %v1859_v50 }
 0x35a   :  { %1654 = vmatpush3.bf16.msra.mxu0 %v1811_v8  ;;  %1573 = vmatprep.mubr.msk.f32.mxu0 %vm1775_vm0, %v1776_v9 }
 0x35b   :  { %1655 = vmatprep.subr.bf16.mxu0 %v1774_v1 }
 0x35e   :  { %1657 = vmatpush3.bf16.msra.mxu0 %v1819_v14 }
 0x35f   :  { %1664 = vmatprep.subr.bf16.mxu0 %v1774_v1 }
 0x42c   :  { %v323_v51 = vpop.f32.mrb[2].mxu0 }
 0x42d   :  { %v328_v52 = vrot.slane %v323_v51, 7  ;;  %v1553_v53 = vpop.f32.mrb[3].mxu0 }
 0x42f   :  { %v330_v54 = vadd.f32 %v328_v52, %v1848_v32 }
 0x431   :  { %1704 = vtanh.f32 %v330_v54  ;;  %v331_v56 = vmul.f32 0.5, %v330_v54 }
 0x433   :  { %1706 = vtanh.f32 %v331_v56 }
 0x43b   :  { %v1705_v55 = vpop.eup %1704 }
 0x43c   :  { %341 = vrot.lane.b32.xlu0 %v1705_v55, %s1778_s1 }
 0x43d   :  { %v1707_v57 = vpop.eup %1706 }
 0x43e   :  { %v333_v58 = vadd.f32 1.0, %v1707_v57 }
 0x440   :  { %v334_v59 = vmul.f32 0.5, %v333_v58 }
 0x442   :  { %v339_v63 = vmul.f32 %v337_v62, %v334_v59 }
 0x4ae   :  { %v342_v60 = vpop.permute.xlu0 %341 }
 0x4af   :  { %v344_v61 = vmul.f32 %v342_v60, %v334_v59 }
 0x4b1   :  { %346 = vrot.lane.b32.xlu1 %v344_v61, %s1777_s0 }
 0x523   :  { %v347_v0 = vpop.permute.xlu1 %346 }
 0x524   :  { %v349_v2 = vadd.f32 %v347_v0, %v339_v63 }
 0x526   :  { %1708 = vtanh.f32 %v349_v2  ;;  %v442_v24 = vrot.slane %v349_v2, 7 }
 0x530   :  { %v1709_v3 = vpop.eup %1708 }
 0x531   :  { %352 = vrot.lane.b32.xlu0 %v1709_v3, %s1778_s1 }
 0x5a3   :  { %v353_v4 = vpop.permute.xlu0 %352 }
 0x5a4   :  { %v355_v5 = vmul.f32 %v353_v4, %v334_v59 }
 0x5a6   :  { %v357_v6 = vrot.slane %v355_v5, 1 }
 0x5a8   :  { %358 = vrot.lane.b32.xlu1 %v357_v6, %s1777_s0 }
 0x61a   :  { %v1874_v7 = vpop.permute.xlu1 %358 }
 0x61b   :  { %1563 = vmatmul.mubr.msk.f32.vlgmr.msra.gmra.mrb[2].mxu1 %vm151_vm2, %v1874_v7 }
 0x61c   :  { %1660 = vmatpush3.bf16.msra.mxu1 %v1811_v8  ;;  %1584 = vmatprep.mubr.msk.f32.mxu1 %vm1775_vm0, %v1776_v9 }
 0x61d   :  { %1661 = vmatprep.subr.bf16.mxu1 %v1774_v1 }
 0x620   :  { %1663 = vmatpush3.bf16.msra.mxu1 %v1819_v14 }
 0x621   :  { %1670 = vmatprep.subr.bf16.mxu1 %v1774_v1 }
 0x6ee   :  { %v428_v10 = vpop.f32.mrb[2].mxu1 }
 0x6ef   :  { %v433_v11 = vrot.slane %v428_v10, 6  ;;  %v1564_v12 = vpop.f32.mrb[3].mxu1 }
 0x6f1   :  { %v435_v13 = vadd.f32 %v433_v11, %v1850_v33 }
 0x6f3   :  { %1710 = vtanh.f32 %v435_v13  ;;  %v436_v18 = vmul.f32 0.5, %v435_v13 }
 0x6f5   :  { %1712 = vtanh.f32 %v436_v18 }
 0x6fd   :  { %v1711_v15 = vpop.eup %1710 }
 0x6fe   :  { %446 = vrot.lane.b32.xlu0 %v1711_v15, %s1778_s1 }
 0x6ff   :  { %v1713_v19 = vpop.eup %1712 }
 0x700   :  { %v438_v20 = vadd.f32 1.0, %v1713_v19 }
 0x702   :  { %v439_v21 = vmul.f32 0.5, %v438_v20 }
 0x704   :  { %v444_v25 = vmul.f32 %v442_v24, %v439_v21 }
 0x770   :  { %v447_v22 = vpop.permute.xlu0 %446 }
 0x771   :  { %v449_v23 = vmul.f32 %v447_v22, %v439_v21 }
 0x773   :  { %451 = vrot.lane.b32.xlu1 %v449_v23, %s1777_s0 }
 0x7e5   :  { %v452_v26 = vpop.permute.xlu1 %451 }
 0x7e6   :  { %v454_v27 = vadd.f32 %v452_v26, %v444_v25 }
 0x7e8   :  { %1714 = vtanh.f32 %v454_v27  ;;  %v547_v48 = vrot.slane %v454_v27, 7 }
 0x7f2   :  { %v1715_v28 = vpop.eup %1714 }
 0x7f3   :  { %457 = vrot.lane.b32.xlu0 %v1715_v28, %s1778_s1 }
 0x865   :  { %v458_v29 = vpop.permute.xlu0 %457 }
 0x866   :  { %v460_v30 = vmul.f32 %v458_v29, %v439_v21 }
 0x868   :  { %v462_v35 = vrot.slane %v460_v30, 2 }
 0x86a   :  { %463 = vrot.lane.b32.xlu1 %v462_v35, %s1777_s0 }
 0x8dc   :  { %v1889_v36 = vpop.permute.xlu1 %463 }
 0x8dd   :  { %1574 = vmatmul.mubr.msk.f32.vlgmr.msra.gmra.mrb[4].mxu0 %vm151_vm2, %v1889_v36 }
 0x8de   :  { %1666 = vmatpush3.bf16.msra.mxu0 %v1811_v8  ;;  %1595 = vmatprep.mubr.msk.f32.mxu0 %vm1775_vm0, %v1776_v9 }
 0x8df   :  { %1667 = vmatprep.subr.bf16.mxu0 %v1774_v1 }
 0x8e2   :  { %1669 = vmatpush3.bf16.msra.mxu0 %v1819_v14 }
 0x8e3   :  { %1676 = vmatprep.subr.bf16.mxu0 %v1774_v1 }
 0x9b0   :  { %v533_v37 = vpop.f32.mrb[4].mxu0 }
 0x9b1   :  { %v538_v38 = vrot.slane %v533_v37, 5  ;;  %v1575_v39 = vpop.f32.mrb[5].mxu0 }
 0x9b3   :  { %v540_v40 = vadd.f32 %v538_v38, %v1852_v34 }
 0x9b5   :  { %1716 = vtanh.f32 %v540_v40  ;;  %v541_v42 = vmul.f32 0.5, %v540_v40 }
 0x9b7   :  { %1718 = vtanh.f32 %v541_v42 }
 0x9bf   :  { %v1717_v41 = vpop.eup %1716 }
 0x9c0   :  { %551 = vrot.lane.b32.xlu0 %v1717_v41, %s1778_s1 }
 0x9c1   :  { %v1719_v43 = vpop.eup %1718 }
 0x9c2   :  { %v543_v44 = vadd.f32 1.0, %v1719_v43 }
 0x9c4   :  { %v544_v45 = vmul.f32 0.5, %v543_v44 }
 0x9c6   :  { %v549_v49 = vmul.f32 %v547_v48, %v544_v45 }
 0xa32   :  { %v552_v46 = vpop.permute.xlu0 %551 }
 0xa33   :  { %v554_v47 = vmul.f32 %v552_v46, %v544_v45 }
 0xa35   :  { %556 = vrot.lane.b32.xlu1 %v554_v47, %s1777_s0 }
 0xaa7   :  { %v557_v51 = vpop.permute.xlu1 %556 }
 0xaa8   :  { %v559_v52 = vadd.f32 %v557_v51, %v549_v49 }
 0xaaa   :  { %1720 = vtanh.f32 %v559_v52  ;;  %v652_v6 = vrot.slane %v559_v52, 7 }
 0xab4   :  { %v1721_v53 = vpop.eup %1720 }
 0xab5   :  { %562 = vrot.lane.b32.xlu0 %v1721_v53, %s1778_s1 }
 0xb27   :  { %v563_v54 = vpop.permute.xlu0 %562 }
 0xb28   :  { %v565_v55 = vmul.f32 %v563_v54, %v544_v45 }
 0xb2a   :  { %v567_v56 = vrot.slane %v565_v55, 3 }
 0xb2c   :  { %568 = vrot.lane.b32.xlu1 %v567_v56, %s1777_s0 }
 0xb9e   :  { %v1904_v57 = vpop.permute.xlu1 %568 }
 0xb9f   :  { %1585 = vmatmul.mubr.msk.f32.vlgmr.msra.gmra.mrb[4].mxu1 %vm151_vm2, %v1904_v57 }
 0xba0   :  { %1672 = vmatpush3.bf16.msra.mxu1 %v1811_v8  ;;  %1606 = vmatprep.mubr.msk.f32.mxu1 %vm1775_vm0, %v1776_v9 }
 0xba1   :  { %1673 = vmatprep.subr.bf16.mxu1 %v1774_v1 }
 0xba4   :  { %1675 = vmatpush3.bf16.msra.mxu1 %v1819_v14 }
 0xba5   :  { %1682 = vmatprep.subr.bf16.mxu1 %v1774_v1 }
 0xc72   :  { %v638_v58 = vpop.f32.mrb[4].mxu1 }
 0xc73   :  { %v643_v59 = vrot.slane %v638_v58, 4  ;;  %v1586_v60 = vpop.f32.mrb[5].mxu1 }
 0xc75   :  { %v645_v61 = vadd.f32 %v643_v59, %v1846_v31 }
 0xc77   :  { %1722 = vtanh.f32 %v645_v61  ;;  %v646_v63 = vmul.f32 0.5, %v645_v61 }
 0xc79   :  { %1724 = vtanh.f32 %v646_v63 }
 0xc81   :  { %v1723_v62 = vpop.eup %1722 }
 0xc82   :  { %656 = vrot.lane.b32.xlu0 %v1723_v62, %s1778_s1 }
 0xc83   :  { %v1725_v0 = vpop.eup %1724 }
 0xc84   :  { %v648_v2 = vadd.f32 1.0, %v1725_v0 }
 0xc86   :  { %v649_v3 = vmul.f32 0.5, %v648_v2 }
 0xc88   :  { %v654_v10 = vmul.f32 %v652_v6, %v649_v3 }
 0xcf4   :  { %v657_v4 = vpop.permute.xlu0 %656 }
 0xcf5   :  { %v659_v5 = vmul.f32 %v657_v4, %v649_v3 }
 0xcf7   :  { %661 = vrot.lane.b32.xlu1 %v659_v5, %s1777_s0 }
 0xd69   :  { %v662_v11 = vpop.permute.xlu1 %661 }
 0xd6a   :  { %v664_v12 = vadd.f32 %v662_v11, %v654_v10 }
 0xd6c   :  { %1726 = vtanh.f32 %v664_v12  ;;  %v757_v30 = vrot.slane %v664_v12, 7 }
 0xd76   :  { %v1727_v13 = vpop.eup %1726 }
 0xd77   :  { %667 = vrot.lane.b32.xlu0 %v1727_v13, %s1778_s1 }
 0xde9   :  { %v668_v31 = vpop.permute.xlu0 %667 }
 0xdea   :  { %v670_v15 = vmul.f32 %v668_v31, %v649_v3 }
 0xdec   :  { %v672_v18 = vrot.slane %v670_v15, 4 }
 0xdee   :  { %673 = vrot.lane.b32.xlu1 %v672_v18, %s1777_s0 }
 0xe60   :  { %v1919_v19 = vpop.permute.xlu1 %673 }
 0xe61   :  { %1596 = vmatmul.mubr.msk.f32.vlgmr.msra.gmra.mrb[6].mxu0 %vm151_vm2, %v1919_v19 }
 0xe62   :  { %1678 = vmatpush3.bf16.msra.mxu0 %v1811_v8  ;;  %1617 = vmatprep.mubr.msk.f32.mxu0 %vm1775_vm0, %v1776_v9 }
 0xe63   :  { %1679 = vmatprep.subr.bf16.mxu0 %v1774_v1 }
 0xe66   :  { %1681 = vmatpush3.bf16.msra.mxu0 %v1819_v14 }
 0xf34   :  { %v743_v20 = vpop.f32.mrb[6].mxu0 }
 0xf35   :  { %v748_v21 = vrot.slane %v743_v20, 3  ;;  %v1597_v22 = vpop.f32.mrb[7].mxu0 }
 0xf37   :  { %v750_v23 = vadd.f32 %v748_v21, %v1848_v32  ;;  %v1042_v21 = vld [vmem:[#allocation2 + $0x50] sm:$0xff] }
 0xf39   :  { %1728 = vtanh.f32 %v750_v23  ;;  %v751_v25 = vmul.f32 0.5, %v750_v23  ;;  %v1043_v23 = vld [vmem:[#allocation2 + $0x58] sm:$0xff] }
 0xf3b   :  { %1730 = vtanh.f32 %v751_v25 }
 0xf43   :  { %v1729_v24 = vpop.eup %1728 }
 0xf44   :  { %761 = vrot.lane.b32.xlu0 %v1729_v24, %s1778_s1  ;;  %v1044_v24 = vld [vmem:[#allocation2 + $0x60] sm:$0xff] }
 0xf45   :  { %v1731_v26 = vpop.eup %1730  ;;  %v1686_v25 = vpack.c.bf16 %v1044_v24, %v1043_v23 }
 0xf46   :  { %v753_v8 = vadd.f32 1.0, %v1731_v26 }
 0xf48   :  { %v754_v27 = vmul.f32 0.5, %v753_v8 }
 0xf4a   :  { %v759_v14 = vmul.f32 %v757_v30, %v754_v27  ;;  %v1003_v30 = vsel %vm986_vm6, %v1919_v19, %v1904_v57 }
 0xfb6   :  { %v762_v28 = vpop.permute.xlu0 %761 }
 0xfb7   :  { %v764_v29 = vmul.f32 %v762_v28, %v754_v27 }
 0xfb9   :  { %766 = vrot.lane.b32.xlu1 %v764_v29, %s1777_s0  ;;  %v1002_v29 = vsel %vm986_vm6, %v1904_v57, %v1919_v19  ;;  %v1017_v19 = vrot.slane %v1003_v30, 4 }
0x102b   :  { %v767_v35 = vpop.permute.xlu1 %766 }
0x102c   :  { %v769_v37 = vadd.f32 %v767_v35, %v759_v14 }
0x102e   :  { %1732 = vtanh.f32 %v769_v37  ;;  %v862_v54 = vrot.slane %v769_v37, 7 }
0x1038   :  { %v1733_v38 = vpop.eup %1732 }
0x1039   :  { %772 = vrot.lane.b32.xlu0 %v1733_v38, %s1778_s1 }
0x10ab   :  { %v773_v32 = vpop.permute.xlu0 %772 }
0x10ac   :  { %v775_v39 = vmul.f32 %v773_v32, %v754_v27 }
0x10ae   :  { %v777_v40 = vrot.slane %v775_v39, 5  ;;  %v1014_v39 = vrot.slane %v1002_v29, 5 }
0x10b0   :  { %778 = vrot.lane.b32.xlu1 %v777_v40, %s1777_s0 }
0x1122   :  { %v1933_v41 = vpop.permute.xlu1 %778 }
0x1123   :  { %1607 = vmatmul.mubr.msk.f32.vlgmr.msra.gmra.mrb[6].mxu1 %vm151_vm2, %v1933_v41  ;;  %v1004_v37 = vsel %vm986_vm6, %v1933_v41, %v1889_v36 }
0x1124   :  { %1628 = vmatprep.mubr.msk.f32.mxu1 %vm1775_vm0, %v1776_v9 }
0x11f6   :  { %v848_v42 = vpop.f32.mrb[6].mxu1 }
0x11f7   :  { %v853_v43 = vrot.slane %v848_v42, 2  ;;  %v1608_v44 = vpop.f32.mrb[7].mxu1 }
0x11f9   :  { %v855_v45 = vadd.f32 %v853_v43, %v1850_v33 }
0x11fb   :  { %1734 = vtanh.f32 %v855_v45  ;;  %v856_v47 = vmul.f32 0.5, %v855_v45 }
0x11fd   :  { %1736 = vtanh.f32 %v856_v47 }
0x1205   :  { %v1735_v46 = vpop.eup %1734 }
0x1206   :  { %866 = vrot.lane.b32.xlu0 %v1735_v46, %s1778_s1 }
0x1207   :  { %v1737_v48 = vpop.eup %1736 }
0x1208   :  { %v858_v49 = vadd.f32 1.0, %v1737_v48 }
0x120a   :  { %v859_v51 = vmul.f32 0.5, %v858_v49  ;;  %v1984_v49 = vshrl.u32 %v25_v16, 7 }
0x120c   :  { %v864_v9 = vmul.f32 %v862_v54, %v859_v51  ;;  %vm1127_vm13 = vcmp.eq.s32.totalorder %v1984_v49, %v1835_v17  ;;  %v1210_v23 = vsub.s32 2, %v1984_v49 }
0x1278   :  { %v867_v52 = vpop.permute.xlu0 %866 }
0x1279   :  { %v869_v53 = vmul.f32 %v867_v52, %v859_v51  ;;  %v1163_v52 = vsub.s32 0, %v1984_v49 }
0x127b   :  { %871 = vrot.lane.b32.xlu1 %v869_v53, %s1777_s0  ;;  %v1139_v53 = vsub.s32 3, %v1984_v49 }
0x12ed   :  { %v872_v55 = vpop.permute.xlu1 %871 }
0x12ee   :  { %v874_v56 = vadd.f32 %v872_v55, %v864_v9  ;;  %v1147_v9 = vsub.s32 5, %v1984_v49 }
0x12f0   :  { %1738 = vtanh.f32 %v874_v56  ;;  %v967_v13 = vrot.slane %v874_v56, 7 }
0x12fa   :  { %v1739_v58 = vpop.eup %1738 }
0x12fb   :  { %877 = vrot.lane.b32.xlu0 %v1739_v58, %s1778_s1  ;;  %v1994_v58 = vld [vmem:[#allocation2 + $0x78] sm:$0x1f] }
0x136d   :  { %v878_v33 = vpop.permute.xlu0 %877 }
0x136e   :  { %v880_v59 = vmul.f32 %v878_v33, %v859_v51  ;;  %v1130_v51 = vsub.s32 1, %v1984_v49 }
0x1370   :  { %v882_v60 = vrot.slane %v880_v59, 6 }
0x1372   :  { %883 = vrot.lane.b32.xlu1 %v882_v60, %s1777_s0 }
0x13e4   :  { %v884_v61 = vpop.permute.xlu1 %883 }
0x13e5   :  { %1618 = vmatmul.mubr.msk.f32.vlgmr.msra.gmra.mrb[8].mxu0 %vm151_vm2, %v884_v61  ;;  %v996_v28 = vsel %vm986_vm6, %v1874_v7, %v884_v61  ;;  %v1005_v40 = vsel %vm986_vm6, %v884_v61, %v1874_v7 }
0x13e6   :  { %v1008_v14 = vrot.slane %v996_v28, 7  ;;  %v1023_v44 = vrot.slane %v1005_v40, 2  ;;  %v1257_v40 = vsub.s32 4, %v1984_v49 }
0x14b8   :  { %v953_v62 = vpop.f32.mrb[8].mxu0 }
0x14b9   :  { %v958_v63 = vrot.slane %v953_v62, 1  ;;  %v1619_v0 = vpop.f32.mrb[9].mxu0 }
0x14bb   :  { %v960_v2 = vadd.f32 %v958_v63, %v1852_v34  ;;  %v1041_v34 = vld [vmem:[#allocation2 + $0x48] sm:$0xff] }
0x14bc   :  { %v1683_v22 = vpack.c.bf16 %v1042_v21, %v1041_v34 }
0x14bd   :  { %1740 = vtanh.f32 %v960_v2  ;;  %v961_v4 = vmul.f32 0.5, %v960_v2 }
0x14be   :  { %1684 = vmatpush3.bf16.msra.mxu1 %v1683_v22 }
0x14bf   :  { %1742 = vtanh.f32 %v961_v4  ;;  %1685 = vmatprep.subr.bf16.mxu1 %v1774_v1  ;;  %v999_v1 = vsel %vm986_vm6, %v1889_v36, %v1933_v41  ;;  %v1020_v36 = vrot.slane %v1004_v37, 3 }
0x14c0   :  { %v1011_v38 = vrot.slane %v999_v1, 6 }
0x14c2   :  { %1687 = vmatpush3.bf16.msra.mxu1 %v1686_v25 }
0x14c7   :  { %v1741_v3 = vpop.eup %1740 }
0x14c8   :  { %971 = vrot.lane.b32.xlu0 %v1741_v3, %s1778_s1 }
0x14c9   :  { %v1743_v5 = vpop.eup %1742 }
0x14ca   :  { %v963_v6 = vadd.f32 1.0, %v1743_v5 }
0x14cc   :  { %v964_v10 = vmul.f32 0.5, %v963_v6 }
0x14ce   :  { %v969_v31 = vmul.f32 %v967_v13, %v964_v10 }
0x153a   :  { %v972_v11 = vpop.permute.xlu0 %971 }
0x153b   :  { %v974_v12 = vmul.f32 %v972_v11, %v964_v10 }
0x153d   :  { %976 = vrot.lane.b32.xlu1 %v974_v12, %s1777_s0 }
0x15af   :  { %v977_v15 = vpop.permute.xlu1 %976 }
0x15b0   :  { %v979_v18 = vadd.f32 %v977_v15, %v969_v31 }
0x15b2   :  { %1744 = vtanh.f32 %v979_v18 }
0x15bc   :  { %v1745_v20 = vpop.eup %1744 }
0x15bd   :  { %982 = vrot.lane.b32.xlu0 %v1745_v20, %s1778_s1 }
0x162f   :  { %v983_v26 = vpop.permute.xlu0 %982 }
0x1630   :  { %v985_v8 = vmul.f32 %v983_v26, %v964_v10  ;;  %v1123_v10 = vld [vmem:[#allocation2 + $0x70] sm:$0x1f] }
0x1632   :  { %v989_v27 = vrot.slane %v985_v8, 7 }
0x1634   :  { %990 = vrot.lane.b32.xlu1 %v989_v27, %s1777_s0 }
0x16a6   :  { %v991_v35 = vpop.permute.xlu1 %990 }
0x16a7   :  { %v993_v32 = vsel %vm986_vm6, %v1859_v50, %v991_v35  ;;  %v1006_v42 = vsel %vm986_vm6, %v991_v35, %v1859_v50  ;;  %v1472_v50 = vld [vmem:[#allocation2 + $0x68] ss:$0 sm:$0xff] }
0x16a8   :  { %v1029_v57 = vsel %vm1028_vm7, %v993_v32, %v1008_v14  ;;  %v1026_v46 = vrot.slane %v1006_v42, 1 }
0x16a9   :  { %v1031_v43 = vsel %vm1030_vm8, %v1029_v57, %v1011_v38 }
0x16aa   :  { %v1033_v41 = vsel %vm1032_vm9, %v1031_v43, %v1014_v39 }
0x16ab   :  { %v1034_v45 = vsel %vm46_vm1, %v1033_v41, %v1017_v19 }
0x16ac   :  { %v1036_v47 = vsel %vm1035_vm10, %v1034_v45, %v1020_v36 }
0x16ad   :  { %v1038_v48 = vsel %vm1037_vm11, %v1036_v47, %v1023_v44 }
0x16ae   :  { %v1040_v7 = vsel %vm1039_vm12, %v1038_v48, %v1026_v46 }
0x16af   :  { %1629 = vmatmul.mubr.msk.f32.vlgmr.msra.gmra.mrb[8].mxu1 %vm151_vm2, %v1040_v7 }
0x1782   :  { %v1119_v54 = vpop.f32.mrb[8].mxu1 }
0x1783   :  { %v1990_v55 = vadd.f32 %v1472_v50, %v1119_v54  ;;  %v1630_v56 = vpop.f32.mrb[9].mxu1  ;;  %v1155_v54 = vsub.s32 7, %v1984_v49 }
0x1785   :  { %v1131_v16 = vrot.slane %v1990_v55, %v1130_v51  ;;  %v1164_v33 = vrot.slane %v1990_v55, %v1163_v52  ;;  %v1140_v59 = vrot.slane %v1990_v55, %v1139_v53  ;;  %v1148_v60 = vrot.slane %v1990_v55, %v1147_v9 }
0x1786   :  { %v1304_v53 = vsub.s32 6, %v1984_v49 }
0x1787   :  { %v1132_v61 = vsel %vm1127_vm13, %v1131_v16, -inf  ;;  %v2004_v62 = vadd.f32 %v1164_v33, %v1994_v58  ;;  %v1141_v2 = vsel %vm1127_vm13, %v1140_v59, -inf  ;;  %v1149_v3 = vsel %vm1127_vm13, %v1148_v60, -inf }
0x1788   :  { %v1134_v63 = vsel %vm1133_vm14, %v1132_v61, -inf  ;;  %v1142_v4 = vsel %vm1133_vm14, %v1141_v2, -inf  ;;  %v1150_v5 = vsel %vm1133_vm14, %v1149_v3, -inf  ;;  %v1156_v33 = vrot.slane %v1990_v55, %v1155_v54 }
0x1789   :  { %1135 = vmax.xlane.f32.xlu0 %v1134_v63  ;;  %v1166_v0 = vsel %vm1133_vm14, %v2004_v62, -inf }
0x178a   :  { %1167 = vmax.xlane.f32.xlu1 %v1166_v0  ;;  %v1157_v63 = vsel %vm1127_vm13, %v1156_v33, -inf }
0x178b   :  { %v1158_v2 = vsel %vm1133_vm14, %v1157_v63, -inf }
0x178d   :  { %1143 = vmax.xlane.f32.xlu0 %v1142_v4 }
0x178e   :  { %1151 = vmax.xlane.f32.xlu1 %v1150_v5 }
0x1816   :  { %v1136_v6 = vpop.xlane.xlu0 %1135 }
0x1817   :  { %v2017_v11 = vpop.xlane.xlu1 %1167 }
0x1818   :  { %v1186_v12 = vadd.f32 %v2017_v11, %v1136_v6 }
0x181a   :  { %v2020_v13 = vadd.f32 %v1186_v12, %v1123_v10  ;;  %v1144_v27 = vpop.xlane.xlu0 %1143 }
0x181b   :  { %v1152_v36 = vpop.xlane.xlu1 %1151 }
0x181c   :  { %v1188_v31 = vsel %vm1133_vm14, %v2020_v13, -inf }
0x181d   :  { %v1189_v15 = vrot.slane %v1188_v31, 4 }
0x181f   :  { %v1190_v18 = vmax.f32 %v1188_v31, %v1189_v15 }
0x1821   :  { %v1191_v20 = vrot.slane %v1190_v18, 2 }
0x1823   :  { %v1192_v34 = vmax.f32 %v1190_v18, %v1191_v20 }
0x1825   :  { %v1193_v21 = vrot.slane %v1192_v34, 1 }
0x1827   :  { %v2024_v22 = vmax.f32 %v1192_v34, %v1193_v21 }
0x1829   :  { %vm1195_vm15 = vcmp.eq.f32.partialorder %v2020_v13, %v2024_v22  ;;  %v1207_v24 = vadd.f32 %v2024_v22, %v1990_v55 }
0x182b   :  { %v1211_v25 = vrot.slane %v1207_v24, %v1210_v23 }
0x182d   :  { %v2032_v26 = vadd.f32 %v1211_v25, %v1994_v58 }
0x182f   :  { %v1213_v8 = vsel %vm1133_vm14, %v2032_v26, -inf }
0x1830   :  { %1214 = vmax.xlane.f32.xlu0 %v1213_v8 }
0x18bd   :  { %v2036_v28 = vpop.xlane.xlu0 %1214 }
0x18be   :  { %v1233_v1 = vadd.f32 %v2036_v28, %v1144_v27  ;;  %vm1216_vm13 = vcmp.eq.f32.partialorder %v2032_v26, %v2036_v28 }
0x18c0   :  { %v2039_v29 = vadd.f32 %v1233_v1, %v1123_v10 }
0x18c2   :  { %v1235_v30 = vsel %vm1133_vm14, %v2039_v29, -inf }
0x18c3   :  { %v1236_v14 = vrot.slane %v1235_v30, 4 }
0x18c5   :  { %v1237_v35 = vmax.f32 %v1235_v30, %v1236_v14 }
0x18c7   :  { %v1238_v37 = vrot.slane %v1237_v35, 2 }
0x18c9   :  { %v1239_v38 = vmax.f32 %v1237_v35, %v1238_v37 }
0x18cb   :  { %v1240_v32 = vrot.slane %v1239_v38, 1 }
0x18cd   :  { %v2043_v39 = vmax.f32 %v1239_v38, %v1240_v32 }
0x18cf   :  { %vm1242_vm0 = vcmp.eq.f32.partialorder %v2039_v29, %v2043_v39  ;;  %v1254_v57 = vadd.f32 %v2043_v39, %v1990_v55 }
0x18d1   :  { %v1258_v19 = vrot.slane %v1254_v57, %v1257_v40 }
0x18d3   :  { %v1259_v42 = vadd.f32 %v1258_v19, %v1994_v58 }
0x18d5   :  { %v1260_v43 = vsel %vm1133_vm14, %v1259_v42, -inf }
0x18d6   :  { %1261 = vmax.xlane.f32.xlu0 %v1260_v43 }
0x1963   :  { %v1262_v41 = vpop.xlane.xlu0 %1261 }
0x1964   :  { %v1280_v44 = vadd.f32 %v1262_v41, %v1152_v36  ;;  %vm1263_vm1 = vcmp.eq.f32.partialorder %v1259_v42, %v1262_v41 }
0x1965   :  { %v1264_v16 = vsel %vm1263_vm1, %v1835_v17, 5 }
0x1966   :  { %v1281_v45 = vadd.f32 %v1280_v44, %v1123_v10  ;;  %v2061_v61 = vsel %vm1133_vm14, %v1264_v16, 2147483647 }
0x1967   :  { %v1267_v0 = vshra.s32 %v2061_v61, 16 }
0x1968   :  { %v1282_v46 = vsel %vm1133_vm14, %v1281_v45, -inf }
0x1969   :  { %v1283_v47 = vrot.slane %v1282_v46, 4  ;;  %v2068_v3 = vcvt.s32.f32 %v1267_v0 }
0x196b   :  { %v1284_v48 = vmax.f32 %v1282_v46, %v1283_v47 }
0x196d   :  { %v1285_v7 = vrot.slane %v1284_v48, 2 }
0x196f   :  { %v1286_v50 = vmax.f32 %v1284_v48, %v1285_v7 }
0x1971   :  { %v1287_v51 = vrot.slane %v1286_v50, 1 }
0x1973   :  { %v1288_v52 = vmax.f32 %v1286_v50, %v1287_v51 }
0x1975   :  { %vm1289_vm2 = vcmp.eq.f32.partialorder %v1281_v45, %v1288_v52  ;;  %v1301_v9 = vadd.f32 %v1288_v52, %v1990_v55 }
0x1976   :  { %v1290_v32 = vsel %vm1289_vm2, %v1984_v49, 5  ;;  %vm1347_vm2 = vcmp.eq.s32.totalorder %v1835_v17, 15 }
0x1977   :  { %v1305_v56 = vrot.slane %v1301_v9, %v1304_v53  ;;  %v1291_v40 = vsel %vm1133_vm14, %v1290_v32, 2147483647 }
0x1978   :  { %v1292_v19 = vrot.slane %v1291_v40, 4 }
0x1979   :  { %v1306_v59 = vadd.f32 %v1305_v56, %v1994_v58 }
0x197a   :  { %vm1293_vm8 = vcmp.lt.s32.totalorder %v1291_v40, %v1292_v19 }
0x197b   :  { %v1307_v60 = vsel %vm1133_vm14, %v1306_v59, -inf  ;;  %v1294_v36 = vsel %vm1293_vm8, %v1291_v40, %v1292_v19  ;;  %vm1378_vm8 = vcmp.eq.s32.totalorder %v1835_v17, 13 }
0x197c   :  { %1308 = vmax.xlane.f32.xlu1 %v1307_v60  ;;  %v1295_v48 = vrot.slane %v1294_v36, 2  ;;  %v1217_v60 = vsel %vm1216_vm13, %v1835_v17, 5  ;;  %vm1390_vm13 = vcmp.eq.s32.totalorder %v1835_v17, 12 }
0x197d   :  { %v2089_v26 = vsel %vm1133_vm14, %v1217_v60, 2147483647 }
0x197e   :  { %vm1296_vm12 = vcmp.lt.s32.totalorder %v1294_v36, %v1295_v48 }
0x197f   :  { %v1297_v53 = vsel %vm1296_vm12, %v1294_v36, %v1295_v48 }
0x1980   :  { %1159 = vmax.xlane.f32.xlu1 %v1158_v2  ;;  %v1298_v9 = vrot.slane %v1297_v53, 1 }
0x1982   :  { %vm1299_vm1 = vcmp.lt.s32.totalorder %v1297_v53, %v1298_v9 }
0x1983   :  { %v1300_v63 = vsel %vm1299_vm1, %v1297_v53, %v1298_v9 }
0x1984   :  { %1270 = vmin.xlane.f32.xlu1 %v2068_v3 }
0x1a09   :  { %v1309_v58 = vpop.xlane.xlu1 %1308 }
0x1a0a   :  { %vm1310_vm3 = vcmp.eq.f32.partialorder %v1306_v59, %v1309_v58 }
0x1a0b   :  { %v1311_v4 = vsel %vm1310_vm3, %v1835_v17, 5  ;;  %vm1364_vm3 = vcmask 39936  }
0x1a0c   :  { %v1312_v5 = vsel %vm1133_vm14, %v1311_v4, 2147483647 }
0x1a0d   :  { %v1314_v6 = vshra.s32 %v1312_v5, 16  ;;  %v1313_v12 = vand.u32 65535, %v1312_v5  ;;  %v1160_v20 = vpop.xlane.xlu1 %1159 }
0x1a0e   :  { %v1327_v34 = vadd.f32 %v1309_v58, %v1160_v20 }
0x1a0f   :  { %v1316_v10 = vcvt.s32.f32 %v1314_v6  ;;  %v1315_v15 = vcvt.s32.f32 %v1313_v12  ;;  %v1266_v12 = vand.u32 65535, %v2061_v61 }
0x1a10   :  { %v1328_v21 = vsel %vm1035_vm10, %v1327_v34, -inf }
0x1a11   :  { %1317 = vmin.xlane.f32.xlu0 %v1316_v10  ;;  %v1329_v23 = vrot.slane %v1328_v21, 4  ;;  %v1268_v20 = vcvt.s32.f32 %v1266_v12 }
0x1a13   :  { %v1330_v24 = vmax.f32 %v1328_v21, %v1329_v23  ;;  %v1243_v23 = vsel %vm1242_vm0, %v1984_v49, 5 }
0x1a14   :  { %v1244_v61 = vsel %vm1133_vm14, %v1243_v23, 2147483647 }
0x1a15   :  { %v1331_v25 = vrot.slane %v1330_v24, 2 }
0x1a17   :  { %v1332_v8 = vmax.f32 %v1330_v24, %v1331_v25  ;;  %v1245_v24 = vrot.slane %v1244_v61, 4 }
0x1a19   :  { %v1333_v27 = vrot.slane %v1332_v8, 1 }
0x1a1b   :  { %v1334_v1 = vmax.f32 %v1332_v8, %v1333_v27 }
0x1a1d   :  { %vm1335_vm5 = vcmp.eq.f32.partialorder %v1327_v34, %v1334_v1 }
0x1a1e   :  { %v1336_v30 = vsel %vm1335_vm5, %v1984_v49, 5 }
0x1a1f   :  { %v1337_v14 = vsel %vm1035_vm10, %v1336_v30, 2147483647 }
0x1a20   :  { %v1338_v35 = vrot.slane %v1337_v14, 4 }
0x1a22   :  { %vm1339_vm6 = vcmp.lt.s32.totalorder %v1337_v14, %v1338_v35 }
0x1a23   :  { %v1340_v37 = vsel %vm1339_vm6, %v1337_v14, %v1338_v35 }
0x1a24   :  { %v1341_v38 = vrot.slane %v1340_v37, 2 }
0x1a26   :  { %vm1342_vm7 = vcmp.lt.s32.totalorder %v1340_v37, %v1341_v38 }
0x1a27   :  { %v1343_v57 = vsel %vm1342_vm7, %v1340_v37, %v1341_v38  ;;  %vm1246_vm7 = vcmp.lt.s32.totalorder %v1244_v61, %v1245_v24 }
0x1a28   :  { %v1344_v42 = vrot.slane %v1343_v57, 1  ;;  %v1247_v14 = vsel %vm1246_vm7, %v1244_v61, %v1245_v24  ;;  %vm1420_vm7 = vcmp.eq.s32.totalorder %v1835_v17, 10 }
0x1a29   :  { %v1248_v40 = vrot.slane %v1247_v14, 2 }
0x1a2a   :  { %vm1345_vm9 = vcmp.lt.s32.totalorder %v1343_v57, %v1344_v42 }
0x1a2b   :  { %v1346_v47 = vsel %vm1345_vm9, %v1343_v57, %v1344_v42  ;;  %vm1249_vm9 = vcmp.lt.s32.totalorder %v1247_v14, %v1248_v40 }
0x1a2c   :  { %vm1350_vm11 = vcmp.eq.s32.totalorder %v1984_v49, %v1346_v47  ;;  %v1348_v33 = vcvt.s32.f32 %v1346_v47 }
0x1a2e   :  { %v1349_v2 = vsel %vm1347_vm2, %v1348_v33, 0.0 }
0x1a9e   :  { %v1318_v31 = vpop.xlane.xlu0 %1317 }
0x1a9f   :  { %vm1319_vm4 = vcmp.eq.f32.partialorder %v1316_v10, %v1318_v31  ;;  %v1324_v43 = vcvt.f32.s32 %v1318_v31  ;;  %v1271_v10 = vpop.xlane.xlu1 %1270 }
0x1aa0   :  { %v1320_v18 = vsel %vm1319_vm4, %v1315_v15, inf  ;;  %vm1359_vm4 = vcmp.eq.s32.totalorder %v1835_v17, 14  ;;  %vm1272_vm6 = vcmp.eq.f32.partialorder %v2068_v3, %v1271_v10  ;;  %v1277_v27 = vcvt.f32.s32 %v1271_v10 }
0x1aa1   :  { %1321 = vmin.xlane.f32.xlu0 %v1320_v18  ;;  %v1325_v44 = vshll.u32 %v1324_v43, 16  ;;  %v1220_v18 = vshra.s32 %v2089_v26, 16  ;;  %v1273_v21 = vsel %vm1272_vm6, %v1268_v20, inf }
0x1aa2   :  { %v1278_v37 = vshll.u32 %v1277_v27, 16 }
0x1aa3   :  { %v1222_v34 = vcvt.s32.f32 %v1220_v18 }
0x1b2e   :  { %v1322_v41 = vpop.xlane.xlu0 %1321 }
0x1b2f   :  { %v1323_v46 = vcvt.f32.s32 %v1322_v41  ;;  %v1250_v41 = vsel %vm1249_vm9, %v1247_v14, %v1248_v40  ;;  %vm1438_vm9 = vcmp.eq.s32.totalorder %v1835_v17, 9 }
0x1b31   :  { %v1326_v7 = vadd.s32 %v1325_v44, %v1323_v46  ;;  %v1251_v46 = vrot.slane %v1250_v41, 1 }
0x1b33   :  { %v1351_v45 = vsel %vm1350_vm11, %v1326_v7, 0  ;;  %vm1169_vm11 = vcmp.eq.f32.partialorder %v2004_v62, %v2017_v11  ;;  %vm1252_vm12 = vcmp.lt.s32.totalorder %v1250_v41, %v1251_v46 }
0x1b34   :  { %v1352_v50 = vsel %vm1035_vm10, %v1351_v45, 0  ;;  %v1170_v45 = vsel %vm1169_vm11, %v1835_v17, 5  ;;  %vm1450_vm11 = vcmp.eq.s32.totalorder %v1835_v17, 8 }
0x1b35   :  { %v1353_v51 = vrot.slane %v1352_v50, 4 }
0x1b37   :  { %v1354_v52 = vadd.s32 %v1353_v51, %v1352_v50  ;;  %v1253_v50 = vsel %vm1252_vm12, %v1250_v41, %v1251_v46 }
0x1b39   :  { %v1355_v54 = vrot.slane %v1354_v52, 2 }
0x1b3b   :  { %v1356_v56 = vadd.s32 %v1355_v54, %v1354_v52  ;;  %v2109_v54 = vsel %vm1133_vm14, %v1170_v45, 2147483647 }
0x1b3c   :  { %v1173_v60 = vshra.s32 %v2109_v54, 16 }
0x1b3d   :  { %v1357_v16 = vrot.slane %v1356_v56, 1 }
0x1b3f   :  { %v1358_v59 = vadd.s32 %v1357_v16, %v1356_v56  ;;  %v1219_v16 = vand.u32 65535, %v2089_v26 }
0x1b41   :  { %v1360_v0 = vcvt.s32.f32 %v1358_v59  ;;  %vm1362_vm5 = vcmp.eq.s32.totalorder %v1835_v17, %v1358_v59 }
0x1b42   :  { %v1363_v58 = vsel %vm1362_vm5, %v1300_v63, 0  ;;  %v1221_v63 = vcvt.s32.f32 %v1219_v16  ;;  %vm1408_vm5 = vcmp.eq.s32.totalorder %v1835_v17, 11 }
0x1b43   :  { %v1365_v4 = vsel %vm1364_vm3, %v1363_v58, 0  ;;  %v1361_v28 = vsel %vm1359_vm4, %v1360_v0, %v1349_v2  ;;  %v1175_v0 = vcvt.s32.f32 %v1173_v60  ;;  %v1196_v58 = vsel %vm1195_vm15, %v1984_v49, 5 }
0x1b44   :  { %v1367_v5 = vshrl.u32 %v1365_v4, 16  ;;  %v1366_v6 = vand.u32 65535, %v1365_v4  ;;  %v1197_v4 = vsel %vm1133_vm14, %v1196_v58, 2147483647 }
0x1b45   :  { %v1198_v26 = vrot.slane %v1197_v4, 4 }
0x1b46   :  { %v1369_v31 = vcvt.s32.f32 %v1367_v5  ;;  %v1368_v15 = vcvt.s32.f32 %v1366_v6 }
0x1b47   :  { %vm1199_vm4 = vcmp.lt.s32.totalorder %v1197_v4, %v1198_v26 }
0x1b48   :  { %1372 = vadd.xlane.f32.xlu0 %v1369_v31  ;;  %1370 = vadd.xlane.f32.xlu1 %v1368_v15  ;;  %v1200_v15 = vsel %vm1199_vm4, %v1197_v4, %v1198_v26 }
0x1b49   :  { %v1201_v23 = vrot.slane %v1200_v15, 2 }
0x1b4b   :  { %vm1202_vm14 = vcmp.lt.s32.totalorder %v1200_v15, %v1201_v23 }
0x1b4c   :  { %1274 = vmin.xlane.f32.xlu0 %v1273_v21  ;;  %1223 = vmin.xlane.f32.xlu1 %v1222_v34 }
0x1bd5   :  { %v1373_v25 = vpop.xlane.xlu0 %1372  ;;  %v1371_v8 = vpop.xlane.xlu1 %1370 }
0x1bd6   :  { %v1375_v1 = vcvt.f32.s32 %v1373_v25  ;;  %v1374_v3 = vcvt.f32.s32 %v1371_v8 }
0x1bd8   :  { %v1376_v30 = vshll.u32 %v1375_v1, 16  ;;  %v1203_v1 = vsel %vm1202_vm14, %v1200_v15, %v1201_v23 }
0x1bd9   :  { %v1275_v35 = vpop.xlane.xlu0 %1274  ;;  %v1224_v11 = vpop.xlane.xlu1 %1223 }
0x1bda   :  { %v1377_v38 = vadd.s32 %v1376_v30, %v1374_v3  ;;  %v1276_v32 = vcvt.f32.s32 %v1275_v35  ;;  %vm1225_vm2 = vcmp.eq.f32.partialorder %v1222_v34, %v1224_v11  ;;  %v1230_v6 = vcvt.f32.s32 %v1224_v11 }
0x1bdb   :  { %v1226_v2 = vsel %vm1225_vm2, %v1221_v63, inf  ;;  %v1204_v3 = vrot.slane %v1203_v1, 1 }
0x1bdc   :  { %v1379_v29 = vcvt.s32.f32 %v1377_v38  ;;  %vm1381_vm0 = vcmp.eq.s32.totalorder %v1984_v49, %v1377_v38  ;;  %v1279_v39 = vadd.s32 %v1278_v37, %v1276_v32  ;;  %v1231_v20 = vshll.u32 %v1230_v6, 16 }
0x1bdd   :  { %vm1205_vm6 = vcmp.lt.s32.totalorder %v1203_v1, %v1204_v3 }
0x1bde   :  { %v1380_v57 = vsel %vm1378_vm8, %v1379_v29, %v1361_v28  ;;  %v1382_v19 = vsel %vm1381_vm0, %v1279_v39, 0  ;;  %v1206_v38 = vsel %vm1205_vm6, %v1203_v1, %v1204_v3 }
0x1bdf   :  { %v1383_v42 = vsel %vm1035_vm10, %v1382_v19, 0 }
0x1be0   :  { %v1384_v43 = vrot.slane %v1383_v42, 4 }
0x1be2   :  { %v1385_v36 = vadd.s32 %v1384_v43, %v1383_v42  ;;  %v1172_v43 = vand.u32 65535, %v2109_v54 }
0x1be4   :  { %v1386_v44 = vrot.slane %v1385_v36, 2 }
0x1be6   :  { %v1387_v47 = vadd.s32 %v1386_v44, %v1385_v36  ;;  %v1174_v44 = vcvt.s32.f32 %v1172_v43 }
0x1be8   :  { %v1388_v48 = vrot.slane %v1387_v47, 1 }
0x1bea   :  { %v1389_v7 = vadd.s32 %v1388_v48, %v1387_v47 }
0x1bec   :  { %v1391_v51 = vcvt.s32.f32 %v1389_v7  ;;  %vm1393_vm1 = vcmp.eq.s32.totalorder %v1835_v17, %v1389_v7 }
0x1bed   :  { %v1394_v52 = vsel %vm1393_vm1, %v1253_v50, 0 }
0x1bee   :  { %v1395_v53 = vsel %vm1364_vm3, %v1394_v52, 0  ;;  %v1392_v9 = vsel %vm1390_vm13, %v1391_v51, %v1380_v57 }
0x1bef   :  { %v1397_v56 = vshrl.u32 %v1395_v53, 16  ;;  %v1396_v62 = vand.u32 65535, %v1395_v53 }
0x1bf1   :  { %v1399_v33 = vcvt.s32.f32 %v1397_v56  ;;  %v1398_v59 = vcvt.s32.f32 %v1396_v62 }
0x1bf3   :  { %1402 = vadd.xlane.f32.xlu0 %v1399_v33  ;;  %1400 = vadd.xlane.f32.xlu1 %v1398_v59 }
0x1bf7   :  { %1176 = vmin.xlane.f32.xlu1 %v1175_v0  ;;  %1227 = vmin.xlane.f32.xlu0 %v1226_v2 }
0x1c80   :  { %v1403_v28 = vpop.xlane.xlu0 %1402  ;;  %v1401_v5 = vpop.xlane.xlu1 %1400 }
0x1c81   :  { %v1405_v10 = vcvt.f32.s32 %v1403_v28  ;;  %v1404_v31 = vcvt.f32.s32 %v1401_v5 }
0x1c83   :  { %v1406_v12 = vshll.u32 %v1405_v10, 16 }
0x1c84   :  { %v1228_v18 = vpop.xlane.xlu0 %1227  ;;  %v1177_v42 = vpop.xlane.xlu1 %1176 }
0x1c85   :  { %v1407_v34 = vadd.s32 %v1406_v12, %v1404_v31  ;;  %v1229_v21 = vcvt.f32.s32 %v1228_v18  ;;  %vm1178_vm0 = vcmp.eq.f32.partialorder %v1175_v0, %v1177_v42  ;;  %v1183_v7 = vcvt.f32.s32 %v1177_v42 }
0x1c86   :  { %v1179_v46 = vsel %vm1178_vm0, %v1174_v44, inf }
0x1c87   :  { %v1409_v13 = vcvt.s32.f32 %v1407_v34  ;;  %vm1411_vm15 = vcmp.eq.s32.totalorder %v1984_v49, %v1407_v34  ;;  %v1232_v22 = vadd.s32 %v1231_v20, %v1229_v21  ;;  %v1184_v53 = vshll.u32 %v1183_v7, 16 }
0x1c89   :  { %v1410_v61 = vsel %vm1408_vm5, %v1409_v13, %v1392_v9  ;;  %v1412_v24 = vsel %vm1411_vm15, %v1232_v22, 0 }
0x1c8a   :  { %v1413_v25 = vsel %vm1035_vm10, %v1412_v24, 0 }
0x1c8b   :  { %v1414_v8 = vrot.slane %v1413_v25, 4 }
0x1c8d   :  { %v1415_v27 = vadd.s32 %v1414_v8, %v1413_v25 }
0x1c8f   :  { %v1416_v30 = vrot.slane %v1415_v27, 2 }
0x1c91   :  { %v1417_v14 = vadd.s32 %v1416_v30, %v1415_v27 }
0x1c93   :  { %v1418_v35 = vrot.slane %v1417_v14, 1 }
0x1c95   :  { %v1419_v37 = vadd.s32 %v1418_v35, %v1417_v14 }
0x1c97   :  { %vm1423_vm8 = vcmp.eq.s32.totalorder %v1835_v17, %v1419_v37  ;;  %v1421_v32 = vcvt.s32.f32 %v1419_v37 }
0x1c98   :  { %v1424_v40 = vsel %vm1423_vm8, %v1206_v38, 0 }
0x1c99   :  { %v1425_v29 = vsel %vm1364_vm3, %v1424_v40, 0  ;;  %v1422_v39 = vsel %vm1420_vm7, %v1421_v32, %v1410_v61 }
0x1c9a   :  { %v1427_v57 = vshrl.u32 %v1425_v29, 16  ;;  %v1426_v19 = vand.u32 65535, %v1425_v29 }
0x1c9c   :  { %v1429_v36 = vcvt.s32.f32 %v1427_v57  ;;  %v1428_v41 = vcvt.s32.f32 %v1426_v19 }
0x1c9e   :  { %1432 = vadd.xlane.f32.xlu0 %v1429_v36  ;;  %1430 = vadd.xlane.f32.xlu1 %v1428_v41 }
0x1ca2   :  { %1180 = vmin.xlane.f32.xlu0 %v1179_v46 }
0x1d2b   :  { %v1433_v47 = vpop.xlane.xlu0 %1432  ;;  %v1431_v48 = vpop.xlane.xlu1 %1430 }
0x1d2c   :  { %v1435_v45 = vcvt.f32.s32 %v1433_v47  ;;  %v1434_v51 = vcvt.f32.s32 %v1431_v48 }
0x1d2e   :  { %v1436_v50 = vshll.u32 %v1435_v45, 16 }
0x1d2f   :  { %v1181_v52 = vpop.xlane.xlu0 %1180 }
0x1d30   :  { %v1437_v9 = vadd.s32 %v1436_v50, %v1434_v51  ;;  %v1182_v56 = vcvt.f32.s32 %v1181_v52 }
0x1d32   :  { %vm1441_vm3 = vcmp.eq.s32.totalorder %v1984_v49, %v1437_v9  ;;  %v1185_v54 = vadd.s32 %v1184_v53, %v1182_v56  ;;  %v1439_v0 = vcvt.s32.f32 %v1437_v9 }
0x1d34   :  { %v1442_v62 = vsel %vm1441_vm3, %v1185_v54, 0  ;;  %v1440_v4 = vsel %vm1438_vm9, %v1439_v0, %v1422_v39 }
0x1d35   :  { %v1443_v11 = vsel %vm1035_vm10, %v1442_v62, 0 }
0x1d36   :  { %v1444_v16 = vrot.slane %v1443_v11, 4 }
0x1d38   :  { %v1445_v33 = vadd.s32 %v1444_v16, %v1443_v11 }
0x1d3a   :  { %v1446_v59 = vrot.slane %v1445_v33, 2 }
0x1d3c   :  { %v1447_v60 = vadd.s32 %v1446_v59, %v1445_v33 }
0x1d3e   :  { %v1448_v63 = vrot.slane %v1447_v60, 1 }
0x1d40   :  { %v1449_v2 = vadd.s32 %v1448_v63, %v1447_v60 }
0x1d42   :  { %v1451_v58 = vcvt.s32.f32 %v1449_v2 }
0x1d44   :  { %v1452_v26 = vsel %vm1450_vm11, %v1451_v58, %v1440_v4 }
0x1d45   :  { %v1453_v49 = vadd.f32 %v1452_v26, %v1990_v55 }
0x1d47   :  { %1454 = vst [vmem:[%s2135_s2] sm:$0xff] %v1453_v49 }
0x1d48   :  { %1459 = vsyncpa [#allocation3], 1 }

</bundles_post_ra>
